<compile_context>
chip_gen: v5e
topology: v5e:2x2
jax: 0.10.0
libtpu: 0.0.40
codegen_flags: <defaults>
</compile_context>

<pallas_src>
import functools
import math

import jax
import jax.numpy as jnp
from jax.experimental import pallas as pl
from jax.experimental.pallas import tpu as pltpu

# ---- small-shape configuration (consistent with the module's forward) ----
D_MODEL = 32          # stands in for 768
N_HEADS = 4
HEAD_DIM = D_MODEL // N_HEADS
N_LAYERS = 2          # stands in for 12
FFN_DIM = 4 * D_MODEL
VOCAB = 64            # stands in for 50265
CLASSES = 4
MAX_SEQ = 8
LN_EPS = 1e-5


# ----------------------------- fused kernel -------------------------------

def _roberta_fused_kernel(pos_ref,                       # scalar-prefetch: (B*M,) flat row idx
                          tok_ref, pemb_ref, bias_ref, emb_g_ref, emb_b_ref,
                          wq_ref, bq_ref, wk_ref, bk_ref, wv_ref, bv_ref,
                          wo_ref, bo_ref, ln1_g_ref, ln1_b_ref,
                          w1_ref, b1_ref, w2_ref, b2_ref, ln2_g_ref, ln2_b_ref,
                          dw_ref, db_ref, pw_ref, pb_ref,
                          mw_ref, mb_ref, lg_ref, lb_ref, dec_ref,
                          cls_out_ref, lm_out_ref,
                          h_scr, cls_scr, gathered,
                          *, n_heads, scale, eps, batch, seq):
    """Grid axis 0 = encoder layer.  Hidden state is carried in VMEM scratch."""
    layer = pl.program_id(0)

    def _ln(x, g, b):
        mean = jnp.mean(x, axis=-1, keepdims=True)
        var = jnp.mean(jnp.square(x - mean), axis=-1, keepdims=True)
        return (x - mean) * jax.lax.rsqrt(var + eps) * g + b

    # ---- grid step 0: embeddings add + LayerNorm ----
    @pl.when(layer == 0)
    def _():
        emb = tok_ref[...].astype(jnp.float32) + pemb_ref[...].astype(jnp.float32)
        h_scr[...] = _ln(emb, emb_g_ref[...], emb_b_ref[...])

    h = h_scr[...]                            # (R, D), R = B*S
    bias = bias_ref[...]                      # (R, R) additive attention bias

    # ---- multi-head self-attention (all heads, all batches, one step) ----
    attn = jnp.zeros(h.shape, jnp.float32)
    for hh in range(n_heads):                 # static unrolled loop, in-VMEM
        q = jnp.dot(h, wq_ref[hh], preferred_element_type=jnp.float32) + bq_ref[hh]
        k = jnp.dot(h, wk_ref[hh], preferred_element_type=jnp.float32) + bk_ref[hh]
        v = jnp.dot(h, wv_ref[hh], preferred_element_type=jnp.float32) + bv_ref[hh]
        # scores over all rows; cross-batch pairs / padded keys masked via `bias`
        s = jax.lax.dot_general(q, k, (((1,), (1,)), ((), ())),
                                preferred_element_type=jnp.float32)
        s = s * scale + bias
        s = s - jnp.max(s, axis=-1, keepdims=True)
        p = jnp.exp(s)
        p = p * pl.reciprocal(jnp.sum(p, axis=-1, keepdims=True), approx=True)
        ctx = jnp.dot(p, v, preferred_element_type=jnp.float32)          # (R, Dh)
        # concat(ctx_h) @ Wo == sum_h ctx_h @ Wo_h  (fold output proj per head)
        attn = attn + jnp.dot(ctx, wo_ref[hh], preferred_element_type=jnp.float32)
    attn = attn + bo_ref[...]

    # ---- add & layer-norm 1 ----
    h1 = _ln(attn + h, ln1_g_ref[...], ln1_b_ref[...])

    # ---- feed-forward ----
    ff = jnp.dot(h1, w1_ref[...], preferred_element_type=jnp.float32) + b1_ref[...]
    # TODO(synk): HF RoBERTa uses exact (erf) GELU; tanh approximation differs ~1e-3.
    ff = jax.nn.gelu(ff, approximate=True)
    ff = jnp.dot(ff, w2_ref[...], preferred_element_type=jnp.float32) + b2_ref[...]

    # ---- add & layer-norm 2; carry to next grid step ----
    h2 = _ln(ff + h1, ln2_g_ref[...], ln2_b_ref[...])
    h_scr[...] = h2

    # ---- heads at the last layer (hidden state still VMEM-resident) ----
    @pl.when(layer == pl.num_programs(0) - 1)
    def _():
        # classification head: rows b*S are the [CLS] rows.
        for b in range(batch):
            cls_scr[pl.ds(b, 1), :] = h_scr[pl.ds(b * seq, 1), :]
        c = cls_scr[...]
        c = jnp.dot(c, dw_ref[...], preferred_element_type=jnp.float32) + db_ref[...]
        # TODO(synk): nn.Dropout(0.1) is the identity at inference time; not applied.
        cls_out_ref[...] = (jnp.dot(c, pw_ref[...], preferred_element_type=jnp.float32)
                            + pb_ref[...]).astype(cls_out_ref.dtype)

        # MLM head: gather masked rows via scalar-prefetched flat indices (SMEM).
        for i in range(gathered.shape[0]):
            idx = pos_ref[i]
            gathered[pl.ds(i, 1), :] = h_scr[pl.ds(idx, 1), :]
        hm = gathered[...]
        hm = jnp.dot(hm, mw_ref[...], preferred_element_type=jnp.float32) + mb_ref[...]
        hm = _ln(hm, lg_ref[...], lb_ref[...])
        lm_out_ref[...] = jnp.dot(hm, dec_ref[...],
                                  preferred_element_type=jnp.float32).astype(lm_out_ref.dtype)


def roberta_forward_pallas(params, tok, pemb, bias, flat_pos, batch, seq):
    R, D = tok.shape
    BM = flat_pos.shape[0]
    C = params["proj_w"].shape[1]
    V = params["dec_w"].shape[1]

    const_args = [tok, pemb, bias, params["emb_ln_g"], params["emb_ln_b"]]
    layer_args = [params[k] for k in ("wq", "bq", "wk", "bk", "wv", "bv",
                                      "wo", "bo", "ln1_g", "ln1_b",
                                      "w1", "b1", "w2", "b2", "ln2_g", "ln2_b")]
    head_args = [params[k] for k in ("dense_w", "dense_b", "proj_w", "proj_b",
                                     "dmlm_w", "dmlm_b", "ln_g", "ln_b", "dec_w")]

    def const_spec(x):
        n = x.ndim
        return pl.BlockSpec(x.shape, lambda l, pos, n=n: (0,) * n)

    def layer_spec(x):
        # leading layer axis squeezed away; selected by the grid index.
        rest = x.shape[1:]
        n = len(rest)
        return pl.BlockSpec((None,) + rest, lambda l, pos, n=n: (l,) + (0,) * n)

    in_specs = ([const_spec(a) for a in const_args]
                + [layer_spec(a) for a in layer_args]
                + [const_spec(a) for a in head_args])

    grid_spec = pltpu.PrefetchScalarGridSpec(
        num_scalar_prefetch=1,
        grid=(N_LAYERS,),
        in_specs=in_specs,
        out_specs=[pl.BlockSpec((batch, C), lambda l, pos: (0, 0)),
                   pl.BlockSpec((BM, V), lambda l, pos: (0, 0))],
        scratch_shapes=[pltpu.VMEM((R, D), jnp.float32),     # hidden-state carry
                        pltpu.VMEM((batch, D), jnp.float32),  # [CLS] rows
                        pltpu.VMEM((BM, D), jnp.float32)],    # masked rows
    )
    return pl.pallas_call(
        functools.partial(_roberta_fused_kernel, n_heads=N_HEADS,
                          scale=1.0 / math.sqrt(HEAD_DIM), eps=LN_EPS,
                          batch=batch, seq=seq),
        out_shape=(jax.ShapeDtypeStruct((batch, C), jnp.float32),
                   jax.ShapeDtypeStruct((BM, V), jnp.float32)),
        grid_spec=grid_spec,
        compiler_params=pltpu.CompilerParams(
            dimension_semantics=("arbitrary",)),  # layers are sequentially dependent
    )(flat_pos, *const_args, *layer_args, *head_args)


# ----------------------------- model (glue) -------------------------------

def init_params(key):
    keys = iter(jax.random.split(key, 64))

    def w(shape, scale=0.02):
        return jax.random.normal(next(keys), shape, jnp.float32) * scale

    L = N_LAYERS
    p = {
        "word_emb": w((VOCAB, D_MODEL)),
        "pos_emb": w((MAX_SEQ, D_MODEL)),
        "emb_ln_g": jnp.ones((1, D_MODEL), jnp.float32),
        "emb_ln_b": jnp.zeros((1, D_MODEL), jnp.float32),
        # per-layer stacked weights (layer axis leads; selected by BlockSpec index_map)
        "wq": w((L, N_HEADS, D_MODEL, HEAD_DIM)),
        "bq": jnp.zeros((L, N_HEADS, 1, HEAD_DIM), jnp.float32),
        "wk": w((L, N_HEADS, D_MODEL, HEAD_DIM)),
        "bk": jnp.zeros((L, N_HEADS, 1, HEAD_DIM), jnp.float32),
        "wv": w((L, N_HEADS, D_MODEL, HEAD_DIM)),
        "bv": jnp.zeros((L, N_HEADS, 1, HEAD_DIM), jnp.float32),
        "wo": w((L, N_HEADS, HEAD_DIM, D_MODEL)),
        "bo": jnp.zeros((L, 1, D_MODEL), jnp.float32),
        "ln1_g": jnp.ones((L, 1, D_MODEL), jnp.float32),
        "ln1_b": jnp.zeros((L, 1, D_MODEL), jnp.float32),
        "w1": w((L, D_MODEL, FFN_DIM)),
        "b1": jnp.zeros((L, 1, FFN_DIM), jnp.float32),
        "w2": w((L, FFN_DIM, D_MODEL)),
        "b2": jnp.zeros((L, 1, D_MODEL), jnp.float32),
        "ln2_g": jnp.ones((L, 1, D_MODEL), jnp.float32),
        "ln2_b": jnp.zeros((L, 1, D_MODEL), jnp.float32),
        # head params (mirror the nn.Module __init__)
        "dense_w": w((D_MODEL, D_MODEL)),                   # self.dense[0]
        "dense_b": jnp.zeros((1, D_MODEL), jnp.float32),
        "proj_w": w((D_MODEL, CLASSES)),                    # self.proj
        "proj_b": jnp.zeros((1, CLASSES), jnp.float32),
        "dmlm_w": w((D_MODEL, D_MODEL)),                    # self.dense_mlm
        "dmlm_b": jnp.zeros((1, D_MODEL), jnp.float32),
        "ln_g": jnp.ones((1, D_MODEL), jnp.float32),        # self.layer_norm
        "ln_b": jnp.zeros((1, D_MODEL), jnp.float32),
        "dec_w": w((D_MODEL, VOCAB)),                       # self.decoder (no bias)
    }
    return p


def roberta_mlm_forward(params, _input, _mask, mlm_tokens, mlm_pos):
    # mlm_tokens is unused in the forward pass (only used for the loss),
    # matching the PyTorch module.
    del mlm_tokens
    B, S = _input.shape
    R = B * S

    # token-id embedding lookup is plain-JAX glue; everything else is in-kernel
    tok = jnp.take(params["word_emb"], _input.reshape(R), axis=0)        # (R, D)
    pemb = jnp.tile(params["pos_emb"][:S], (B, 1))                       # (R, D)

    # Additive attention bias over flattened rows: blocks cross-batch pairs and
    # padded keys in one (R, R) matrix so attention stays 2-D inside the kernel.
    row_batch = jnp.arange(R, dtype=jnp.int32) // S
    same_batch = row_batch[:, None] == row_batch[None, :]
    key_ok = _mask.reshape(R) > 0
    bias = jnp.where(same_batch & key_ok[None, :], 0.0, -1e9).astype(jnp.float32)

    M = mlm_pos.shape[1]
    flat_pos = (mlm_pos.astype(jnp.int32)
                + (jnp.arange(B, dtype=jnp.int32) * S)[:, None]).reshape(B * M)

    logits_cls, logits_lm_flat = roberta_forward_pallas(
        params, tok, pemb, bias, flat_pos, B, S)
    return logits_cls, logits_lm_flat.reshape(B, M, VOCAB)


if __name__ == "__main__":
    root = jax.random.PRNGKey(0)
    k_param, k_in, k_pos, k_tok = jax.random.split(root, 4)

    params = init_params(k_param)

    B, S, M = 2, MAX_SEQ, 4
    _input = jax.random.randint(k_in, (B, S), 0, VOCAB, dtype=jnp.int32)
    _mask = jnp.ones((B, S), dtype=jnp.int32).at[:, -1].set(0)   # pad last token
    mlm_pos = jax.random.randint(k_pos, (B, M), 0, S, dtype=jnp.int32)
    mlm_tokens = jax.random.randint(k_tok, (B, M), 0, VOCAB, dtype=jnp.int32)

    fwd = jax.jit(roberta_mlm_forward)
    logits_cls, logits_lm = fwd(params, _input, _mask, mlm_tokens, mlm_pos)
    jax.block_until_ready((logits_cls, logits_lm))

    assert logits_cls.shape == (B, CLASSES)
    assert logits_lm.shape == (B, M, VOCAB)
    assert jnp.all(jnp.isfinite(logits_cls)) and jnp.all(jnp.isfinite(logits_lm))
    print("KERNEL_OK")
</pallas_src>

<mosaic_0001>
module attributes {stable_mosaic.version = 11 : i64} {
  func.func @_roberta_fused_kernel(%arg0: i32, %arg1: memref<8xi32, #tpu.memory_space<smem>>, %arg2: memref<16x32xf32, #tpu.memory_space<vmem>>, %arg3: memref<16x32xf32, #tpu.memory_space<vmem>>, %arg4: memref<16x16xf32, #tpu.memory_space<vmem>>, %arg5: memref<1x32xf32, #tpu.memory_space<vmem>>, %arg6: memref<1x32xf32, #tpu.memory_space<vmem>>, %arg7: memref<1x4x32x8xf32, #tpu.memory_space<vmem>>, %arg8: memref<1x4x1x8xf32, #tpu.memory_space<vmem>>, %arg9: memref<1x4x32x8xf32, #tpu.memory_space<vmem>>, %arg10: memref<1x4x1x8xf32, #tpu.memory_space<vmem>>, %arg11: memref<1x4x32x8xf32, #tpu.memory_space<vmem>>, %arg12: memref<1x4x1x8xf32, #tpu.memory_space<vmem>>, %arg13: memref<1x4x8x32xf32, #tpu.memory_space<vmem>>, %arg14: memref<1x1x32xf32, #tpu.memory_space<vmem>>, %arg15: memref<1x1x32xf32, #tpu.memory_space<vmem>>, %arg16: memref<1x1x32xf32, #tpu.memory_space<vmem>>, %arg17: memref<1x32x128xf32, #tpu.memory_space<vmem>>, %arg18: memref<1x1x128xf32, #tpu.memory_space<vmem>>, %arg19: memref<1x128x32xf32, #tpu.memory_space<vmem>>, %arg20: memref<1x1x32xf32, #tpu.memory_space<vmem>>, %arg21: memref<1x1x32xf32, #tpu.memory_space<vmem>>, %arg22: memref<1x1x32xf32, #tpu.memory_space<vmem>>, %arg23: memref<32x32xf32, #tpu.memory_space<vmem>>, %arg24: memref<1x32xf32, #tpu.memory_space<vmem>>, %arg25: memref<32x4xf32, #tpu.memory_space<vmem>>, %arg26: memref<1x4xf32, #tpu.memory_space<vmem>>, %arg27: memref<32x32xf32, #tpu.memory_space<vmem>>, %arg28: memref<1x32xf32, #tpu.memory_space<vmem>>, %arg29: memref<1x32xf32, #tpu.memory_space<vmem>>, %arg30: memref<1x32xf32, #tpu.memory_space<vmem>>, %arg31: memref<32x64xf32, #tpu.memory_space<vmem>>, %arg32: memref<2x4xf32, #tpu.memory_space<vmem>>, %arg33: memref<8x64xf32, #tpu.memory_space<vmem>>, %arg34: memref<16x32xf32, #tpu.memory_space<vmem>>, %arg35: memref<2x32xf32, #tpu.memory_space<vmem>>, %arg36: memref<8x32xf32, #tpu.memory_space<vmem>>) attributes {dimension_semantics = [#tpu.dimension_semantics<arbitrary>], iteration_bounds = array<i64: 2>, scalar_prefetch = 1 : i64, scratch_operands = 3 : i64, tpu.core_type = #tpu.core_type<tc>, window_params = [{pipeline_mode = #tpu.pipeline_mode<synchronous>, transform_indices = @transform_0, window_bounds = array<i64: 16, 32>}, {pipeline_mode = #tpu.pipeline_mode<synchronous>, transform_indices = @transform_1, window_bounds = array<i64: 16, 32>}, {pipeline_mode = #tpu.pipeline_mode<synchronous>, transform_indices = @transform_2, window_bounds = array<i64: 16, 16>}, {pipeline_mode = #tpu.pipeline_mode<synchronous>, transform_indices = @transform_3, window_bounds = array<i64: 1, 32>}, {pipeline_mode = #tpu.pipeline_mode<synchronous>, transform_indices = @transform_4, window_bounds = array<i64: 1, 32>}, {transform_indices = @transform_5, window_bounds = array<i64: 1, 4, 32, 8>}, {transform_indices = @transform_6, window_bounds = array<i64: 1, 4, 1, 8>}, {transform_indices = @transform_7, window_bounds = array<i64: 1, 4, 32, 8>}, {transform_indices = @transform_8, window_bounds = array<i64: 1, 4, 1, 8>}, {transform_indices = @transform_9, window_bounds = array<i64: 1, 4, 32, 8>}, {transform_indices = @transform_10, window_bounds = array<i64: 1, 4, 1, 8>}, {transform_indices = @transform_11, window_bounds = array<i64: 1, 4, 8, 32>}, {transform_indices = @transform_12, window_bounds = array<i64: 1, 1, 32>}, {transform_indices = @transform_13, window_bounds = array<i64: 1, 1, 32>}, {transform_indices = @transform_14, window_bounds = array<i64: 1, 1, 32>}, {transform_indices = @transform_15, window_bounds = array<i64: 1, 32, 128>}, {transform_indices = @transform_16, window_bounds = array<i64: 1, 1, 128>}, {transform_indices = @transform_17, window_bounds = array<i64: 1, 128, 32>}, {transform_indices = @transform_18, window_bounds = array<i64: 1, 1, 32>}, {transform_indices = @transform_19, window_bounds = array<i64: 1, 1, 32>}, {transform_indices = @transform_20, window_bounds = array<i64: 1, 1, 32>}, {pipeline_mode = #tpu.pipeline_mode<synchronous>, transform_indices = @transform_21, window_bounds = array<i64: 32, 32>}, {pipeline_mode = #tpu.pipeline_mode<synchronous>, transform_indices = @transform_22, window_bounds = array<i64: 1, 32>}, {pipeline_mode = #tpu.pipeline_mode<synchronous>, transform_indices = @transform_23, window_bounds = array<i64: 32, 4>}, {pipeline_mode = #tpu.pipeline_mode<synchronous>, transform_indices = @transform_24, window_bounds = array<i64: 1, 4>}, {pipeline_mode = #tpu.pipeline_mode<synchronous>, transform_indices = @transform_25, window_bounds = array<i64: 32, 32>}, {pipeline_mode = #tpu.pipeline_mode<synchronous>, transform_indices = @transform_26, window_bounds = array<i64: 1, 32>}, {pipeline_mode = #tpu.pipeline_mode<synchronous>, transform_indices = @transform_27, window_bounds = array<i64: 1, 32>}, {pipeline_mode = #tpu.pipeline_mode<synchronous>, transform_indices = @transform_28, window_bounds = array<i64: 1, 32>}, {pipeline_mode = #tpu.pipeline_mode<synchronous>, transform_indices = @transform_29, window_bounds = array<i64: 32, 64>}, {pipeline_mode = #tpu.pipeline_mode<synchronous>, transform_indices = @transform_30, window_bounds = array<i64: 2, 4>}, {pipeline_mode = #tpu.pipeline_mode<synchronous>, transform_indices = @transform_31, window_bounds = array<i64: 8, 64>}]} {
    %c0_i32 = arith.constant 0 : i32
    %0 = arith.cmpi eq, %arg0, %c0_i32 : i32
    %1 = arith.extui %0 : i1 to i32
    %c0_i32_0 = arith.constant 0 : i32
    %2 = arith.cmpi ne, %1, %c0_i32_0 : i32
    scf.if %2 {
      %c0_195 = arith.constant 0 : index
      %c0_196 = arith.constant 0 : index
      %255 = vector.load %arg2[%c0_195, %c0_196] : memref<16x32xf32, #tpu.memory_space<vmem>>, vector<16x32xf32>
      %c0_197 = arith.constant 0 : index
      %c0_198 = arith.constant 0 : index
      %256 = vector.load %arg3[%c0_197, %c0_198] : memref<16x32xf32, #tpu.memory_space<vmem>>, vector<16x32xf32>
      %257 = arith.addf %255, %256 : vector<16x32xf32>
      %c0_199 = arith.constant 0 : index
      %c0_200 = arith.constant 0 : index
      %258 = vector.load %arg5[%c0_199, %c0_200] : memref<1x32xf32, #tpu.memory_space<vmem>>, vector<1x32xf32>
      %c0_201 = arith.constant 0 : index
      %c0_202 = arith.constant 0 : index
      %259 = vector.load %arg6[%c0_201, %c0_202] : memref<1x32xf32, #tpu.memory_space<vmem>>, vector<1x32xf32>
      %cst_203 = arith.constant dense<0.000000e+00> : vector<16xf32>
      %260 = vector.multi_reduction <add>, %257, %cst_203 [1] : vector<16x32xf32> to vector<16xf32>
      %261 = vector.shape_cast %260 : vector<16xf32> to vector<16x1xf32>
      %cst_204 = arith.constant 3.200000e+01 : f32
      %262 = vector.broadcast %cst_204 : f32 to vector<16x1xf32>
      %263 = arith.divf %261, %262 : vector<16x1xf32>
      %264 = vector.broadcast %263 : vector<16x1xf32> to vector<16x32xf32>
      %265 = arith.subf %257, %264 : vector<16x32xf32>
      %266 = arith.mulf %265, %265 : vector<16x32xf32>
      %cst_205 = arith.constant dense<0.000000e+00> : vector<16xf32>
      %267 = vector.multi_reduction <add>, %266, %cst_205 [1] : vector<16x32xf32> to vector<16xf32>
      %268 = vector.shape_cast %267 : vector<16xf32> to vector<16x1xf32>
      %cst_206 = arith.constant 3.200000e+01 : f32
      %269 = vector.broadcast %cst_206 : f32 to vector<16x1xf32>
      %270 = arith.divf %268, %269 : vector<16x1xf32>
      %271 = vector.broadcast %263 : vector<16x1xf32> to vector<16x32xf32>
      %272 = arith.subf %257, %271 : vector<16x32xf32>
      %cst_207 = arith.constant 9.99999974E-6 : f32
      %273 = vector.broadcast %cst_207 : f32 to vector<16x1xf32>
      %274 = arith.addf %270, %273 : vector<16x1xf32>
      %275 = math.rsqrt %274 : vector<16x1xf32>
      %276 = vector.broadcast %275 : vector<16x1xf32> to vector<16x32xf32>
      %277 = arith.mulf %272, %276 : vector<16x32xf32>
      %278 = vector.broadcast %258 : vector<1x32xf32> to vector<16x32xf32>
      %279 = arith.mulf %277, %278 : vector<16x32xf32>
      %280 = vector.broadcast %259 : vector<1x32xf32> to vector<16x32xf32>
      %281 = arith.addf %279, %280 : vector<16x32xf32>
      %c0_208 = arith.constant 0 : index
      %c0_209 = arith.constant 0 : index
      %282 = vector.load %arg34[%c0_208, %c0_209] : memref<16x32xf32, #tpu.memory_space<vmem>>, vector<16x32xf32>
      tpu.vector_store %arg34[%c0_208, %c0_209], %281 {strides = array<i32>} : memref<16x32xf32, #tpu.memory_space<vmem>>, vector<16x32xf32>,
    } else {
    }
    %c0 = arith.constant 0 : index
    %c0_1 = arith.constant 0 : index
    %3 = vector.load %arg34[%c0, %c0_1] : memref<16x32xf32, #tpu.memory_space<vmem>>, vector<16x32xf32>
    %c0_2 = arith.constant 0 : index
    %c0_3 = arith.constant 0 : index
    %4 = vector.load %arg4[%c0_2, %c0_3] : memref<16x16xf32, #tpu.memory_space<vmem>>, vector<16x16xf32>
    %cst = arith.constant 0.000000e+00 : f32
    %5 = vector.broadcast %cst : f32 to vector<16x32xf32>
    %c0_4 = arith.constant 0 : index
    %c0_5 = arith.constant 0 : index
    %c0_6 = arith.constant 0 : index
    %c0_7 = arith.constant 0 : index
    %6 = vector.load %arg7[%c0_4, %c0_5, %c0_6, %c0_7] : memref<1x4x32x8xf32, #tpu.memory_space<vmem>>, vector<1x1x32x8xf32>
    %7 = vector.shape_cast %6 : vector<1x1x32x8xf32> to vector<32x8xf32>
    %cst_8 = arith.constant dense<0.000000e+00> : vector<16x8xf32>
    %8 = tpu.matmul %3, %7, %cst_8 {dimension_numbers = #tpu.dot_dimension_numbers<[1], [0], [0], [1], [0, 0, 1, 1], [], []>} : vector<16x32xf32>, vector<32x8xf32>, vector<16x8xf32> -> vector<16x8xf32>
    %c0_9 = arith.constant 0 : index
    %c0_10 = arith.constant 0 : index
    %c0_11 = arith.constant 0 : index
    %c0_12 = arith.constant 0 : index
    %9 = vector.load %arg8[%c0_9, %c0_10, %c0_11, %c0_12] : memref<1x4x1x8xf32, #tpu.memory_space<vmem>>, vector<1x1x1x8xf32>
    %10 = vector.shape_cast %9 : vector<1x1x1x8xf32> to vector<1x8xf32>
    %11 = vector.broadcast %10 : vector<1x8xf32> to vector<16x8xf32>
    %12 = arith.addf %8, %11 : vector<16x8xf32>
    %c0_13 = arith.constant 0 : index
    %c0_14 = arith.constant 0 : index
    %c0_15 = arith.constant 0 : index
    %c0_16 = arith.constant 0 : index
    %13 = vector.load %arg9[%c0_13, %c0_14, %c0_15, %c0_16] : memref<1x4x32x8xf32, #tpu.memory_space<vmem>>, vector<1x1x32x8xf32>
    %14 = vector.shape_cast %13 : vector<1x1x32x8xf32> to vector<32x8xf32>
    %cst_17 = arith.constant dense<0.000000e+00> : vector<16x8xf32>
    %15 = tpu.matmul %3, %14, %cst_17 {dimension_numbers = #tpu.dot_dimension_numbers<[1], [0], [0], [1], [0, 0, 1, 1], [], []>} : vector<16x32xf32>, vector<32x8xf32>, vector<16x8xf32> -> vector<16x8xf32>
    %c0_18 = arith.constant 0 : index
    %c0_19 = arith.constant 0 : index
    %c0_20 = arith.constant 0 : index
    %c0_21 = arith.constant 0 : index
    %16 = vector.load %arg10[%c0_18, %c0_19, %c0_20, %c0_21] : memref<1x4x1x8xf32, #tpu.memory_space<vmem>>, vector<1x1x1x8xf32>
    %17 = vector.shape_cast %16 : vector<1x1x1x8xf32> to vector<1x8xf32>
    %18 = vector.broadcast %17 : vector<1x8xf32> to vector<16x8xf32>
    %19 = arith.addf %15, %18 : vector<16x8xf32>
    %c0_22 = arith.constant 0 : index
    %c0_23 = arith.constant 0 : index
    %c0_24 = arith.constant 0 : index
    %c0_25 = arith.constant 0 : index
    %20 = vector.load %arg11[%c0_22, %c0_23, %c0_24, %c0_25] : memref<1x4x32x8xf32, #tpu.memory_space<vmem>>, vector<1x1x32x8xf32>
    %21 = vector.shape_cast %20 : vector<1x1x32x8xf32> to vector<32x8xf32>
    %cst_26 = arith.constant dense<0.000000e+00> : vector<16x8xf32>
    %22 = tpu.matmul %3, %21, %cst_26 {dimension_numbers = #tpu.dot_dimension_numbers<[1], [0], [0], [1], [0, 0, 1, 1], [], []>} : vector<16x32xf32>, vector<32x8xf32>, vector<16x8xf32> -> vector<16x8xf32>
    %c0_27 = arith.constant 0 : index
    %c0_28 = arith.constant 0 : index
    %c0_29 = arith.constant 0 : index
    %c0_30 = arith.constant 0 : index
    %23 = vector.load %arg12[%c0_27, %c0_28, %c0_29, %c0_30] : memref<1x4x1x8xf32, #tpu.memory_space<vmem>>, vector<1x1x1x8xf32>
    %24 = vector.shape_cast %23 : vector<1x1x1x8xf32> to vector<1x8xf32>
    %25 = vector.broadcast %24 : vector<1x8xf32> to vector<16x8xf32>
    %26 = arith.addf %22, %25 : vector<16x8xf32>
    %cst_31 = arith.constant dense<0.000000e+00> : vector<16x16xf32>
    %27 = tpu.matmul %12, %19, %cst_31 {dimension_numbers = #tpu.dot_dimension_numbers<[1], [1], [0], [0], [0, 0, 1, 0], [], []>} : vector<16x8xf32>, vector<16x8xf32>, vector<16x16xf32> -> vector<16x16xf32>
    %cst_32 = arith.constant 0.353553385 : f32
    %28 = vector.broadcast %cst_32 : f32 to vector<16x16xf32>
    %29 = arith.mulf %27, %28 : vector<16x16xf32>
    %30 = arith.addf %29, %4 : vector<16x16xf32>
    %cst_33 = arith.constant dense<0xFF800000> : vector<16xf32>
    %31 = vector.multi_reduction <maximumf>, %30, %cst_33 [1] : vector<16x16xf32> to vector<16xf32>
    %32 = vector.shape_cast %31 : vector<16xf32> to vector<16x1xf32>
    %33 = vector.broadcast %32 : vector<16x1xf32> to vector<16x16xf32>
    %34 = arith.subf %30, %33 : vector<16x16xf32>
    %35 = math.exp %34 : vector<16x16xf32>
    %cst_34 = arith.constant dense<0.000000e+00> : vector<16xf32>
    %36 = vector.multi_reduction <add>, %35, %cst_34 [1] : vector<16x16xf32> to vector<16xf32>
    %37 = vector.shape_cast %36 : vector<16xf32> to vector<16x1xf32>
    %38 = tpu.reciprocal %37 {approx = true} : vector<16x1xf32> -> vector<16x1xf32>
    %39 = vector.broadcast %38 : vector<16x1xf32> to vector<16x16xf32>
    %40 = arith.mulf %35, %39 : vector<16x16xf32>
    %cst_35 = arith.constant dense<0.000000e+00> : vector<16x8xf32>
    %41 = tpu.matmul %40, %26, %cst_35 {dimension_numbers = #tpu.dot_dimension_numbers<[1], [0], [0], [1], [0, 0, 1, 1], [], []>} : vector<16x16xf32>, vector<16x8xf32>, vector<16x8xf32> -> vector<16x8xf32>
    %c0_36 = arith.constant 0 : index
    %c0_37 = arith.constant 0 : index
    %c0_38 = arith.constant 0 : index
    %c0_39 = arith.constant 0 : index
    %42 = vector.load %arg13[%c0_36, %c0_37, %c0_38, %c0_39] : memref<1x4x8x32xf32, #tpu.memory_space<vmem>>, vector<1x1x8x32xf32>
    %43 = vector.shape_cast %42 : vector<1x1x8x32xf32> to vector<8x32xf32>
    %cst_40 = arith.constant dense<0.000000e+00> : vector<16x32xf32>
    %44 = tpu.matmul %41, %43, %cst_40 {dimension_numbers = #tpu.dot_dimension_numbers<[1], [0], [0], [1], [0, 0, 1, 1], [], []>} : vector<16x8xf32>, vector<8x32xf32>, vector<16x32xf32> -> vector<16x32xf32>
    %45 = arith.addf %5, %44 : vector<16x32xf32>
    %c0_41 = arith.constant 0 : index
    %c1 = arith.constant 1 : index
    %c0_42 = arith.constant 0 : index
    %c0_43 = arith.constant 0 : index
    %46 = vector.load %arg7[%c0_41, %c1, %c0_42, %c0_43] : memref<1x4x32x8xf32, #tpu.memory_space<vmem>>, vector<1x1x32x8xf32>
    %47 = vector.shape_cast %46 : vector<1x1x32x8xf32> to vector<32x8xf32>
    %cst_44 = arith.constant dense<0.000000e+00> : vector<16x8xf32>
    %48 = tpu.matmul %3, %47, %cst_44 {dimension_numbers = #tpu.dot_dimension_numbers<[1], [0], [0], [1], [0, 0, 1, 1], [], []>} : vector<16x32xf32>, vector<32x8xf32>, vector<16x8xf32> -> vector<16x8xf32>
    %c0_45 = arith.constant 0 : index
    %c1_46 = arith.constant 1 : index
    %c0_47 = arith.constant 0 : index
    %c0_48 = arith.constant 0 : index
    %49 = vector.load %arg8[%c0_45, %c1_46, %c0_47, %c0_48] : memref<1x4x1x8xf32, #tpu.memory_space<vmem>>, vector<1x1x1x8xf32>
    %50 = vector.shape_cast %49 : vector<1x1x1x8xf32> to vector<1x8xf32>
    %51 = vector.broadcast %50 : vector<1x8xf32> to vector<16x8xf32>
    %52 = arith.addf %48, %51 : vector<16x8xf32>
    %c0_49 = arith.constant 0 : index
    %c1_50 = arith.constant 1 : index
    %c0_51 = arith.constant 0 : index
    %c0_52 = arith.constant 0 : index
    %53 = vector.load %arg9[%c0_49, %c1_50, %c0_51, %c0_52] : memref<1x4x32x8xf32, #tpu.memory_space<vmem>>, vector<1x1x32x8xf32>
    %54 = vector.shape_cast %53 : vector<1x1x32x8xf32> to vector<32x8xf32>
    %cst_53 = arith.constant dense<0.000000e+00> : vector<16x8xf32>
    %55 = tpu.matmul %3, %54, %cst_53 {dimension_numbers = #tpu.dot_dimension_numbers<[1], [0], [0], [1], [0, 0, 1, 1], [], []>} : vector<16x32xf32>, vector<32x8xf32>, vector<16x8xf32> -> vector<16x8xf32>
    %c0_54 = arith.constant 0 : index
    %c1_55 = arith.constant 1 : index
    %c0_56 = arith.constant 0 : index
    %c0_57 = arith.constant 0 : index
    %56 = vector.load %arg10[%c0_54, %c1_55, %c0_56, %c0_57] : memref<1x4x1x8xf32, #tpu.memory_space<vmem>>, vector<1x1x1x8xf32>
    %57 = vector.shape_cast %56 : vector<1x1x1x8xf32> to vector<1x8xf32>
    %58 = vector.broadcast %57 : vector<1x8xf32> to vector<16x8xf32>
    %59 = arith.addf %55, %58 : vector<16x8xf32>
    %c0_58 = arith.constant 0 : index
    %c1_59 = arith.constant 1 : index
    %c0_60 = arith.constant 0 : index
    %c0_61 = arith.constant 0 : index
    %60 = vector.load %arg11[%c0_58, %c1_59, %c0_60, %c0_61] : memref<1x4x32x8xf32, #tpu.memory_space<vmem>>, vector<1x1x32x8xf32>
    %61 = vector.shape_cast %60 : vector<1x1x32x8xf32> to vector<32x8xf32>
    %cst_62 = arith.constant dense<0.000000e+00> : vector<16x8xf32>
    %62 = tpu.matmul %3, %61, %cst_62 {dimension_numbers = #tpu.dot_dimension_numbers<[1], [0], [0], [1], [0, 0, 1, 1], [], []>} : vector<16x32xf32>, vector<32x8xf32>, vector<16x8xf32> -> vector<16x8xf32>
    %c0_63 = arith.constant 0 : index
    %c1_64 = arith.constant 1 : index
    %c0_65 = arith.constant 0 : index
    %c0_66 = arith.constant 0 : index
    %63 = vector.load %arg12[%c0_63, %c1_64, %c0_65, %c0_66] : memref<1x4x1x8xf32, #tpu.memory_space<vmem>>, vector<1x1x1x8xf32>
    %64 = vector.shape_cast %63 : vector<1x1x1x8xf32> to vector<1x8xf32>
    %65 = vector.broadcast %64 : vector<1x8xf32> to vector<16x8xf32>
    %66 = arith.addf %62, %65 : vector<16x8xf32>
    %cst_67 = arith.constant dense<0.000000e+00> : vector<16x16xf32>
    %67 = tpu.matmul %52, %59, %cst_67 {dimension_numbers = #tpu.dot_dimension_numbers<[1], [1], [0], [0], [0, 0, 1, 0], [], []>} : vector<16x8xf32>, vector<16x8xf32>, vector<16x16xf32> -> vector<16x16xf32>
    %cst_68 = arith.constant 0.353553385 : f32
    %68 = vector.broadcast %cst_68 : f32 to vector<16x16xf32>
    %69 = arith.mulf %67, %68 : vector<16x16xf32>
    %70 = arith.addf %69, %4 : vector<16x16xf32>
    %cst_69 = arith.constant dense<0xFF800000> : vector<16xf32>
    %71 = vector.multi_reduction <maximumf>, %70, %cst_69 [1] : vector<16x16xf32> to vector<16xf32>
    %72 = vector.shape_cast %71 : vector<16xf32> to vector<16x1xf32>
    %73 = vector.broadcast %72 : vector<16x1xf32> to vector<16x16xf32>
    %74 = arith.subf %70, %73 : vector<16x16xf32>
    %75 = math.exp %74 : vector<16x16xf32>
    %cst_70 = arith.constant dense<0.000000e+00> : vector<16xf32>
    %76 = vector.multi_reduction <add>, %75, %cst_70 [1] : vector<16x16xf32> to vector<16xf32>
    %77 = vector.shape_cast %76 : vector<16xf32> to vector<16x1xf32>
    %78 = tpu.reciprocal %77 {approx = true} : vector<16x1xf32> -> vector<16x1xf32>
    %79 = vector.broadcast %78 : vector<16x1xf32> to vector<16x16xf32>
    %80 = arith.mulf %75, %79 : vector<16x16xf32>
    %cst_71 = arith.constant dense<0.000000e+00> : vector<16x8xf32>
    %81 = tpu.matmul %80, %66, %cst_71 {dimension_numbers = #tpu.dot_dimension_numbers<[1], [0], [0], [1], [0, 0, 1, 1], [], []>} : vector<16x16xf32>, vector<16x8xf32>, vector<16x8xf32> -> vector<16x8xf32>
    %c0_72 = arith.constant 0 : index
    %c1_73 = arith.constant 1 : index
    %c0_74 = arith.constant 0 : index
    %c0_75 = arith.constant 0 : index
    %82 = vector.load %arg13[%c0_72, %c1_73, %c0_74, %c0_75] : memref<1x4x8x32xf32, #tpu.memory_space<vmem>>, vector<1x1x8x32xf32>
    %83 = vector.shape_cast %82 : vector<1x1x8x32xf32> to vector<8x32xf32>
    %cst_76 = arith.constant dense<0.000000e+00> : vector<16x32xf32>
    %84 = tpu.matmul %81, %83, %cst_76 {dimension_numbers = #tpu.dot_dimension_numbers<[1], [0], [0], [1], [0, 0, 1, 1], [], []>} : vector<16x8xf32>, vector<8x32xf32>, vector<16x32xf32> -> vector<16x32xf32>
    %85 = arith.addf %45, %84 : vector<16x32xf32>
    %c0_77 = arith.constant 0 : index
    %c2 = arith.constant 2 : index
    %c0_78 = arith.constant 0 : index
    %c0_79 = arith.constant 0 : index
    %86 = vector.load %arg7[%c0_77, %c2, %c0_78, %c0_79] : memref<1x4x32x8xf32, #tpu.memory_space<vmem>>, vector<1x1x32x8xf32>
    %87 = vector.shape_cast %86 : vector<1x1x32x8xf32> to vector<32x8xf32>
    %cst_80 = arith.constant dense<0.000000e+00> : vector<16x8xf32>
    %88 = tpu.matmul %3, %87, %cst_80 {dimension_numbers = #tpu.dot_dimension_numbers<[1], [0], [0], [1], [0, 0, 1, 1], [], []>} : vector<16x32xf32>, vector<32x8xf32>, vector<16x8xf32> -> vector<16x8xf32>
    %c0_81 = arith.constant 0 : index
    %c2_82 = arith.constant 2 : index
    %c0_83 = arith.constant 0 : index
    %c0_84 = arith.constant 0 : index
    %89 = vector.load %arg8[%c0_81, %c2_82, %c0_83, %c0_84] : memref<1x4x1x8xf32, #tpu.memory_space<vmem>>, vector<1x1x1x8xf32>
    %90 = vector.shape_cast %89 : vector<1x1x1x8xf32> to vector<1x8xf32>
    %91 = vector.broadcast %90 : vector<1x8xf32> to vector<16x8xf32>
    %92 = arith.addf %88, %91 : vector<16x8xf32>
    %c0_85 = arith.constant 0 : index
    %c2_86 = arith.constant 2 : index
    %c0_87 = arith.constant 0 : index
    %c0_88 = arith.constant 0 : index
    %93 = vector.load %arg9[%c0_85, %c2_86, %c0_87, %c0_88] : memref<1x4x32x8xf32, #tpu.memory_space<vmem>>, vector<1x1x32x8xf32>
    %94 = vector.shape_cast %93 : vector<1x1x32x8xf32> to vector<32x8xf32>
    %cst_89 = arith.constant dense<0.000000e+00> : vector<16x8xf32>
    %95 = tpu.matmul %3, %94, %cst_89 {dimension_numbers = #tpu.dot_dimension_numbers<[1], [0], [0], [1], [0, 0, 1, 1], [], []>} : vector<16x32xf32>, vector<32x8xf32>, vector<16x8xf32> -> vector<16x8xf32>
    %c0_90 = arith.constant 0 : index
    %c2_91 = arith.constant 2 : index
    %c0_92 = arith.constant 0 : index
    %c0_93 = arith.constant 0 : index
    %96 = vector.load %arg10[%c0_90, %c2_91, %c0_92, %c0_93] : memref<1x4x1x8xf32, #tpu.memory_space<vmem>>, vector<1x1x1x8xf32>
    %97 = vector.shape_cast %96 : vector<1x1x1x8xf32> to vector<1x8xf32>
    %98 = vector.broadcast %97 : vector<1x8xf32> to vector<16x8xf32>
    %99 = arith.addf %95, %98 : vector<16x8xf32>
    %c0_94 = arith.constant 0 : index
    %c2_95 = arith.constant 2 : index
    %c0_96 = arith.constant 0 : index
    %c0_97 = arith.constant 0 : index
    %100 = vector.load %arg11[%c0_94, %c2_95, %c0_96, %c0_97] : memref<1x4x32x8xf32, #tpu.memory_space<vmem>>, vector<1x1x32x8xf32>
    %101 = vector.shape_cast %100 : vector<1x1x32x8xf32> to vector<32x8xf32>
    %cst_98 = arith.constant dense<0.000000e+00> : vector<16x8xf32>
    %102 = tpu.matmul %3, %101, %cst_98 {dimension_numbers = #tpu.dot_dimension_numbers<[1], [0], [0], [1], [0, 0, 1, 1], [], []>} : vector<16x32xf32>, vector<32x8xf32>, vector<16x8xf32> -> vector<16x8xf32>
    %c0_99 = arith.constant 0 : index
    %c2_100 = arith.constant 2 : index
    %c0_101 = arith.constant 0 : index
    %c0_102 = arith.constant 0 : index
    %103 = vector.load %arg12[%c0_99, %c2_100, %c0_101, %c0_102] : memref<1x4x1x8xf32, #tpu.memory_space<vmem>>, vector<1x1x1x8xf32>
    %104 = vector.shape_cast %103 : vector<1x1x1x8xf32> to vector<1x8xf32>
    %105 = vector.broadcast %104 : vector<1x8xf32> to vector<16x8xf32>
    %106 = arith.addf %102, %105 : vector<16x8xf32>
    %cst_103 = arith.constant dense<0.000000e+00> : vector<16x16xf32>
    %107 = tpu.matmul %92, %99, %cst_103 {dimension_numbers = #tpu.dot_dimension_numbers<[1], [1], [0], [0], [0, 0, 1, 0], [], []>} : vector<16x8xf32>, vector<16x8xf32>, vector<16x16xf32> -> vector<16x16xf32>
    %cst_104 = arith.constant 0.353553385 : f32
    %108 = vector.broadcast %cst_104 : f32 to vector<16x16xf32>
    %109 = arith.mulf %107, %108 : vector<16x16xf32>
    %110 = arith.addf %109, %4 : vector<16x16xf32>
    %cst_105 = arith.constant dense<0xFF800000> : vector<16xf32>
    %111 = vector.multi_reduction <maximumf>, %110, %cst_105 [1] : vector<16x16xf32> to vector<16xf32>
    %112 = vector.shape_cast %111 : vector<16xf32> to vector<16x1xf32>
    %113 = vector.broadcast %112 : vector<16x1xf32> to vector<16x16xf32>
    %114 = arith.subf %110, %113 : vector<16x16xf32>
    %115 = math.exp %114 : vector<16x16xf32>
    %cst_106 = arith.constant dense<0.000000e+00> : vector<16xf32>
    %116 = vector.multi_reduction <add>, %115, %cst_106 [1] : vector<16x16xf32> to vector<16xf32>
    %117 = vector.shape_cast %116 : vector<16xf32> to vector<16x1xf32>
    %118 = tpu.reciprocal %117 {approx = true} : vector<16x1xf32> -> vector<16x1xf32>
    %119 = vector.broadcast %118 : vector<16x1xf32> to vector<16x16xf32>
    %120 = arith.mulf %115, %119 : vector<16x16xf32>
    %cst_107 = arith.constant dense<0.000000e+00> : vector<16x8xf32>
    %121 = tpu.matmul %120, %106, %cst_107 {dimension_numbers = #tpu.dot_dimension_numbers<[1], [0], [0], [1], [0, 0, 1, 1], [], []>} : vector<16x16xf32>, vector<16x8xf32>, vector<16x8xf32> -> vector<16x8xf32>
    %c0_108 = arith.constant 0 : index
    %c2_109 = arith.constant 2 : index
    %c0_110 = arith.constant 0 : index
    %c0_111 = arith.constant 0 : index
    %122 = vector.load %arg13[%c0_108, %c2_109, %c0_110, %c0_111] : memref<1x4x8x32xf32, #tpu.memory_space<vmem>>, vector<1x1x8x32xf32>
    %123 = vector.shape_cast %122 : vector<1x1x8x32xf32> to vector<8x32xf32>
    %cst_112 = arith.constant dense<0.000000e+00> : vector<16x32xf32>
    %124 = tpu.matmul %121, %123, %cst_112 {dimension_numbers = #tpu.dot_dimension_numbers<[1], [0], [0], [1], [0, 0, 1, 1], [], []>} : vector<16x8xf32>, vector<8x32xf32>, vector<16x32xf32> -> vector<16x32xf32>
    %125 = arith.addf %85, %124 : vector<16x32xf32>
    %c0_113 = arith.constant 0 : index
    %c3 = arith.constant 3 : index
    %c0_114 = arith.constant 0 : index
    %c0_115 = arith.constant 0 : index
    %126 = vector.load %arg7[%c0_113, %c3, %c0_114, %c0_115] : memref<1x4x32x8xf32, #tpu.memory_space<vmem>>, vector<1x1x32x8xf32>
    %127 = vector.shape_cast %126 : vector<1x1x32x8xf32> to vector<32x8xf32>
    %cst_116 = arith.constant dense<0.000000e+00> : vector<16x8xf32>
    %128 = tpu.matmul %3, %127, %cst_116 {dimension_numbers = #tpu.dot_dimension_numbers<[1], [0], [0], [1], [0, 0, 1, 1], [], []>} : vector<16x32xf32>, vector<32x8xf32>, vector<16x8xf32> -> vector<16x8xf32>
    %c0_117 = arith.constant 0 : index
    %c3_118 = arith.constant 3 : index
    %c0_119 = arith.constant 0 : index
    %c0_120 = arith.constant 0 : index
    %129 = vector.load %arg8[%c0_117, %c3_118, %c0_119, %c0_120] : memref<1x4x1x8xf32, #tpu.memory_space<vmem>>, vector<1x1x1x8xf32>
    %130 = vector.shape_cast %129 : vector<1x1x1x8xf32> to vector<1x8xf32>
    %131 = vector.broadcast %130 : vector<1x8xf32> to vector<16x8xf32>
    %132 = arith.addf %128, %131 : vector<16x8xf32>
    %c0_121 = arith.constant 0 : index
    %c3_122 = arith.constant 3 : index
    %c0_123 = arith.constant 0 : index
    %c0_124 = arith.constant 0 : index
    %133 = vector.load %arg9[%c0_121, %c3_122, %c0_123, %c0_124] : memref<1x4x32x8xf32, #tpu.memory_space<vmem>>, vector<1x1x32x8xf32>
    %134 = vector.shape_cast %133 : vector<1x1x32x8xf32> to vector<32x8xf32>
    %cst_125 = arith.constant dense<0.000000e+00> : vector<16x8xf32>
    %135 = tpu.matmul %3, %134, %cst_125 {dimension_numbers = #tpu.dot_dimension_numbers<[1], [0], [0], [1], [0, 0, 1, 1], [], []>} : vector<16x32xf32>, vector<32x8xf32>, vector<16x8xf32> -> vector<16x8xf32>
    %c0_126 = arith.constant 0 : index
    %c3_127 = arith.constant 3 : index
    %c0_128 = arith.constant 0 : index
    %c0_129 = arith.constant 0 : index
    %136 = vector.load %arg10[%c0_126, %c3_127, %c0_128, %c0_129] : memref<1x4x1x8xf32, #tpu.memory_space<vmem>>, vector<1x1x1x8xf32>
    %137 = vector.shape_cast %136 : vector<1x1x1x8xf32> to vector<1x8xf32>
    %138 = vector.broadcast %137 : vector<1x8xf32> to vector<16x8xf32>
    %139 = arith.addf %135, %138 : vector<16x8xf32>
    %c0_130 = arith.constant 0 : index
    %c3_131 = arith.constant 3 : index
    %c0_132 = arith.constant 0 : index
    %c0_133 = arith.constant 0 : index
    %140 = vector.load %arg11[%c0_130, %c3_131, %c0_132, %c0_133] : memref<1x4x32x8xf32, #tpu.memory_space<vmem>>, vector<1x1x32x8xf32>
    %141 = vector.shape_cast %140 : vector<1x1x32x8xf32> to vector<32x8xf32>
    %cst_134 = arith.constant dense<0.000000e+00> : vector<16x8xf32>
    %142 = tpu.matmul %3, %141, %cst_134 {dimension_numbers = #tpu.dot_dimension_numbers<[1], [0], [0], [1], [0, 0, 1, 1], [], []>} : vector<16x32xf32>, vector<32x8xf32>, vector<16x8xf32> -> vector<16x8xf32>
    %c0_135 = arith.constant 0 : index
    %c3_136 = arith.constant 3 : index
    %c0_137 = arith.constant 0 : index
    %c0_138 = arith.constant 0 : index
    %143 = vector.load %arg12[%c0_135, %c3_136, %c0_137, %c0_138] : memref<1x4x1x8xf32, #tpu.memory_space<vmem>>, vector<1x1x1x8xf32>
    %144 = vector.shape_cast %143 : vector<1x1x1x8xf32> to vector<1x8xf32>
    %145 = vector.broadcast %144 : vector<1x8xf32> to vector<16x8xf32>
    %146 = arith.addf %142, %145 : vector<16x8xf32>
    %cst_139 = arith.constant dense<0.000000e+00> : vector<16x16xf32>
    %147 = tpu.matmul %132, %139, %cst_139 {dimension_numbers = #tpu.dot_dimension_numbers<[1], [1], [0], [0], [0, 0, 1, 0], [], []>} : vector<16x8xf32>, vector<16x8xf32>, vector<16x16xf32> -> vector<16x16xf32>
    %cst_140 = arith.constant 0.353553385 : f32
    %148 = vector.broadcast %cst_140 : f32 to vector<16x16xf32>
    %149 = arith.mulf %147, %148 : vector<16x16xf32>
    %150 = arith.addf %149, %4 : vector<16x16xf32>
    %cst_141 = arith.constant dense<0xFF800000> : vector<16xf32>
    %151 = vector.multi_reduction <maximumf>, %150, %cst_141 [1] : vector<16x16xf32> to vector<16xf32>
    %152 = vector.shape_cast %151 : vector<16xf32> to vector<16x1xf32>
    %153 = vector.broadcast %152 : vector<16x1xf32> to vector<16x16xf32>
    %154 = arith.subf %150, %153 : vector<16x16xf32>
    %155 = math.exp %154 : vector<16x16xf32>
    %cst_142 = arith.constant dense<0.000000e+00> : vector<16xf32>
    %156 = vector.multi_reduction <add>, %155, %cst_142 [1] : vector<16x16xf32> to vector<16xf32>
    %157 = vector.shape_cast %156 : vector<16xf32> to vector<16x1xf32>
    %158 = tpu.reciprocal %157 {approx = true} : vector<16x1xf32> -> vector<16x1xf32>
    %159 = vector.broadcast %158 : vector<16x1xf32> to vector<16x16xf32>
    %160 = arith.mulf %155, %159 : vector<16x16xf32>
    %cst_143 = arith.constant dense<0.000000e+00> : vector<16x8xf32>
    %161 = tpu.matmul %160, %146, %cst_143 {dimension_numbers = #tpu.dot_dimension_numbers<[1], [0], [0], [1], [0, 0, 1, 1], [], []>} : vector<16x16xf32>, vector<16x8xf32>, vector<16x8xf32> -> vector<16x8xf32>
    %c0_144 = arith.constant 0 : index
    %c3_145 = arith.constant 3 : index
    %c0_146 = arith.constant 0 : index
    %c0_147 = arith.constant 0 : index
    %162 = vector.load %arg13[%c0_144, %c3_145, %c0_146, %c0_147] : memref<1x4x8x32xf32, #tpu.memory_space<vmem>>, vector<1x1x8x32xf32>
    %163 = vector.shape_cast %162 : vector<1x1x8x32xf32> to vector<8x32xf32>
    %cst_148 = arith.constant dense<0.000000e+00> : vector<16x32xf32>
    %164 = tpu.matmul %161, %163, %cst_148 {dimension_numbers = #tpu.dot_dimension_numbers<[1], [0], [0], [1], [0, 0, 1, 1], [], []>} : vector<16x8xf32>, vector<8x32xf32>, vector<16x32xf32> -> vector<16x32xf32>
    %165 = arith.addf %125, %164 : vector<16x32xf32>
    %c0_149 = arith.constant 0 : index
    %c0_150 = arith.constant 0 : index
    %c0_151 = arith.constant 0 : index
    %166 = vector.load %arg14[%c0_149, %c0_150, %c0_151] : memref<1x1x32xf32, #tpu.memory_space<vmem>>, vector<1x1x32xf32>
    %167 = vector.shape_cast %166 : vector<1x1x32xf32> to vector<1x32xf32>
    %168 = vector.broadcast %167 : vector<1x32xf32> to vector<16x32xf32>
    %169 = arith.addf %165, %168 : vector<16x32xf32>
    %170 = arith.addf %169, %3 : vector<16x32xf32>
    %c0_152 = arith.constant 0 : index
    %c0_153 = arith.constant 0 : index
    %c0_154 = arith.constant 0 : index
    %171 = vector.load %arg15[%c0_152, %c0_153, %c0_154] : memref<1x1x32xf32, #tpu.memory_space<vmem>>, vector<1x1x32xf32>
    %172 = vector.shape_cast %171 : vector<1x1x32xf32> to vector<1x32xf32>
    %c0_155 = arith.constant 0 : index
    %c0_156 = arith.constant 0 : index
    %c0_157 = arith.constant 0 : index
    %173 = vector.load %arg16[%c0_155, %c0_156, %c0_157] : memref<1x1x32xf32, #tpu.memory_space<vmem>>, vector<1x1x32xf32>
    %174 = vector.shape_cast %173 : vector<1x1x32xf32> to vector<1x32xf32>
    %cst_158 = arith.constant dense<0.000000e+00> : vector<16xf32>
    %175 = vector.multi_reduction <add>, %170, %cst_158 [1] : vector<16x32xf32> to vector<16xf32>
    %176 = vector.shape_cast %175 : vector<16xf32> to vector<16x1xf32>
    %cst_159 = arith.constant 3.200000e+01 : f32
    %177 = vector.broadcast %cst_159 : f32 to vector<16x1xf32>
    %178 = arith.divf %176, %177 : vector<16x1xf32>
    %179 = vector.broadcast %178 : vector<16x1xf32> to vector<16x32xf32>
    %180 = arith.subf %170, %179 : vector<16x32xf32>
    %181 = arith.mulf %180, %180 : vector<16x32xf32>
    %cst_160 = arith.constant dense<0.000000e+00> : vector<16xf32>
    %182 = vector.multi_reduction <add>, %181, %cst_160 [1] : vector<16x32xf32> to vector<16xf32>
    %183 = vector.shape_cast %182 : vector<16xf32> to vector<16x1xf32>
    %cst_161 = arith.constant 3.200000e+01 : f32
    %184 = vector.broadcast %cst_161 : f32 to vector<16x1xf32>
    %185 = arith.divf %183, %184 : vector<16x1xf32>
    %186 = vector.broadcast %178 : vector<16x1xf32> to vector<16x32xf32>
    %187 = arith.subf %170, %186 : vector<16x32xf32>
    %cst_162 = arith.constant 9.99999974E-6 : f32
    %188 = vector.broadcast %cst_162 : f32 to vector<16x1xf32>
    %189 = arith.addf %185, %188 : vector<16x1xf32>
    %190 = math.rsqrt %189 : vector<16x1xf32>
    %191 = vector.broadcast %190 : vector<16x1xf32> to vector<16x32xf32>
    %192 = arith.mulf %187, %191 : vector<16x32xf32>
    %193 = vector.broadcast %172 : vector<1x32xf32> to vector<16x32xf32>
    %194 = arith.mulf %192, %193 : vector<16x32xf32>
    %195 = vector.broadcast %174 : vector<1x32xf32> to vector<16x32xf32>
    %196 = arith.addf %194, %195 : vector<16x32xf32>
    %c0_163 = arith.constant 0 : index
    %c0_164 = arith.constant 0 : index
    %c0_165 = arith.constant 0 : index
    %197 = vector.load %arg17[%c0_163, %c0_164, %c0_165] : memref<1x32x128xf32, #tpu.memory_space<vmem>>, vector<1x32x128xf32>
    %198 = vector.shape_cast %197 : vector<1x32x128xf32> to vector<32x128xf32>
    %cst_166 = arith.constant dense<0.000000e+00> : vector<16x128xf32>
    %199 = tpu.matmul %196, %198, %cst_166 {dimension_numbers = #tpu.dot_dimension_numbers<[1], [0], [0], [1], [0, 0, 1, 1], [], []>} : vector<16x32xf32>, vector<32x128xf32>, vector<16x128xf32> -> vector<16x128xf32>
    %c0_167 = arith.constant 0 : index
    %c0_168 = arith.constant 0 : index
    %c0_169 = arith.constant 0 : index
    %200 = vector.load %arg18[%c0_167, %c0_168, %c0_169] : memref<1x1x128xf32, #tpu.memory_space<vmem>>, vector<1x1x128xf32>
    %201 = vector.shape_cast %200 : vector<1x1x128xf32> to vector<1x128xf32>
    %202 = vector.broadcast %201 : vector<1x128xf32> to vector<16x128xf32>
    %203 = arith.addf %199, %202 : vector<16x128xf32>
    %204 = arith.mulf %203, %203 : vector<16x128xf32>
    %205 = arith.mulf %203, %204 : vector<16x128xf32>
    %cst_170 = arith.constant 4.471500e-02 : f32
    %206 = vector.broadcast %cst_170 : f32 to vector<16x128xf32>
    %207 = arith.mulf %206, %205 : vector<16x128xf32>
    %208 = arith.addf %203, %207 : vector<16x128xf32>
    %cst_171 = arith.constant 0.797884583 : f32
    %209 = vector.broadcast %cst_171 : f32 to vector<16x128xf32>
    %210 = arith.mulf %209, %208 : vector<16x128xf32>
    %211 = math.tanh %210 : vector<16x128xf32>
    %cst_172 = arith.constant 1.000000e+00 : f32
    %212 = vector.broadcast %cst_172 : f32 to vector<16x128xf32>
    %213 = arith.addf %212, %211 : vector<16x128xf32>
    %cst_173 = arith.constant 5.000000e-01 : f32
    %214 = vector.broadcast %cst_173 : f32 to vector<16x128xf32>
    %215 = arith.mulf %214, %213 : vector<16x128xf32>
    %216 = arith.mulf %203, %215 : vector<16x128xf32>
    %c0_174 = arith.constant 0 : index
    %c0_175 = arith.constant 0 : index
    %c0_176 = arith.constant 0 : index
    %217 = vector.load %arg19[%c0_174, %c0_175, %c0_176] : memref<1x128x32xf32, #tpu.memory_space<vmem>>, vector<1x128x32xf32>
    %218 = vector.shape_cast %217 : vector<1x128x32xf32> to vector<128x32xf32>
    %cst_177 = arith.constant dense<0.000000e+00> : vector<16x32xf32>
    %219 = tpu.matmul %216, %218, %cst_177 {dimension_numbers = #tpu.dot_dimension_numbers<[1], [0], [0], [1], [0, 0, 1, 1], [], []>} : vector<16x128xf32>, vector<128x32xf32>, vector<16x32xf32> -> vector<16x32xf32>
    %c0_178 = arith.constant 0 : index
    %c0_179 = arith.constant 0 : index
    %c0_180 = arith.constant 0 : index
    %220 = vector.load %arg20[%c0_178, %c0_179, %c0_180] : memref<1x1x32xf32, #tpu.memory_space<vmem>>, vector<1x1x32xf32>
    %221 = vector.shape_cast %220 : vector<1x1x32xf32> to vector<1x32xf32>
    %222 = vector.broadcast %221 : vector<1x32xf32> to vector<16x32xf32>
    %223 = arith.addf %219, %222 : vector<16x32xf32>
    %224 = arith.addf %223, %196 : vector<16x32xf32>
    %c0_181 = arith.constant 0 : index
    %c0_182 = arith.constant 0 : index
    %c0_183 = arith.constant 0 : index
    %225 = vector.load %arg21[%c0_181, %c0_182, %c0_183] : memref<1x1x32xf32, #tpu.memory_space<vmem>>, vector<1x1x32xf32>
    %226 = vector.shape_cast %225 : vector<1x1x32xf32> to vector<1x32xf32>
    %c0_184 = arith.constant 0 : index
    %c0_185 = arith.constant 0 : index
    %c0_186 = arith.constant 0 : index
    %227 = vector.load %arg22[%c0_184, %c0_185, %c0_186] : memref<1x1x32xf32, #tpu.memory_space<vmem>>, vector<1x1x32xf32>
    %228 = vector.shape_cast %227 : vector<1x1x32xf32> to vector<1x32xf32>
    %cst_187 = arith.constant dense<0.000000e+00> : vector<16xf32>
    %229 = vector.multi_reduction <add>, %224, %cst_187 [1] : vector<16x32xf32> to vector<16xf32>
    %230 = vector.shape_cast %229 : vector<16xf32> to vector<16x1xf32>
    %cst_188 = arith.constant 3.200000e+01 : f32
    %231 = vector.broadcast %cst_188 : f32 to vector<16x1xf32>
    %232 = arith.divf %230, %231 : vector<16x1xf32>
    %233 = vector.broadcast %232 : vector<16x1xf32> to vector<16x32xf32>
    %234 = arith.subf %224, %233 : vector<16x32xf32>
    %235 = arith.mulf %234, %234 : vector<16x32xf32>
    %cst_189 = arith.constant dense<0.000000e+00> : vector<16xf32>
    %236 = vector.multi_reduction <add>, %235, %cst_189 [1] : vector<16x32xf32> to vector<16xf32>
    %237 = vector.shape_cast %236 : vector<16xf32> to vector<16x1xf32>
    %cst_190 = arith.constant 3.200000e+01 : f32
    %238 = vector.broadcast %cst_190 : f32 to vector<16x1xf32>
    %239 = arith.divf %237, %238 : vector<16x1xf32>
    %240 = vector.broadcast %232 : vector<16x1xf32> to vector<16x32xf32>
    %241 = arith.subf %224, %240 : vector<16x32xf32>
    %cst_191 = arith.constant 9.99999974E-6 : f32
    %242 = vector.broadcast %cst_191 : f32 to vector<16x1xf32>
    %243 = arith.addf %239, %242 : vector<16x1xf32>
    %244 = math.rsqrt %243 : vector<16x1xf32>
    %245 = vector.broadcast %244 : vector<16x1xf32> to vector<16x32xf32>
    %246 = arith.mulf %241, %245 : vector<16x32xf32>
    %247 = vector.broadcast %226 : vector<1x32xf32> to vector<16x32xf32>
    %248 = arith.mulf %246, %247 : vector<16x32xf32>
    %249 = vector.broadcast %228 : vector<1x32xf32> to vector<16x32xf32>
    %250 = arith.addf %248, %249 : vector<16x32xf32>
    %c0_192 = arith.constant 0 : index
    %c0_193 = arith.constant 0 : index
    %251 = vector.load %arg34[%c0_192, %c0_193] : memref<16x32xf32, #tpu.memory_space<vmem>>, vector<16x32xf32>
    tpu.vector_store %arg34[%c0_192, %c0_193], %250 {strides = array<i32>} : memref<16x32xf32, #tpu.memory_space<vmem>>, vector<16x32xf32>,
    %c1_i32 = arith.constant 1 : i32
    %252 = arith.cmpi eq, %arg0, %c1_i32 : i32
    %253 = arith.extui %252 : i1 to i32
    %c0_i32_194 = arith.constant 0 : i32
    %254 = arith.cmpi ne, %253, %c0_i32_194 : i32
    scf.if %254 {
      %c0_195 = arith.constant 0 : index
      %c0_196 = arith.constant 0 : index
      %255 = vector.load %arg34[%c0_195, %c0_196] : memref<16x32xf32, #tpu.memory_space<vmem>>, vector<1x32xf32>
      %c0_197 = arith.constant 0 : index
      %c0_198 = arith.constant 0 : index
      %256 = vector.load %arg35[%c0_197, %c0_198] : memref<2x32xf32, #tpu.memory_space<vmem>>, vector<1x32xf32>
      tpu.vector_store %arg35[%c0_197, %c0_198], %255 {strides = array<i32>} : memref<2x32xf32, #tpu.memory_space<vmem>>, vector<1x32xf32>,
      %c8 = arith.constant 8 : index
      %c0_199 = arith.constant 0 : index
      %257 = vector.load %arg34[%c8, %c0_199] : memref<16x32xf32, #tpu.memory_space<vmem>>, vector<1x32xf32>
      %c1_200 = arith.constant 1 : index
      %c0_201 = arith.constant 0 : index
      %258 = vector.load %arg35[%c1_200, %c0_201] : memref<2x32xf32, #tpu.memory_space<vmem>>, vector<1x32xf32>
      tpu.vector_store %arg35[%c1_200, %c0_201], %257 {strides = array<i32>} : memref<2x32xf32, #tpu.memory_space<vmem>>, vector<1x32xf32>,
      %c0_202 = arith.constant 0 : index
      %c0_203 = arith.constant 0 : index
      %259 = vector.load %arg35[%c0_202, %c0_203] : memref<2x32xf32, #tpu.memory_space<vmem>>, vector<2x32xf32>
      %c0_204 = arith.constant 0 : index
      %c0_205 = arith.constant 0 : index
      %260 = vector.load %arg23[%c0_204, %c0_205] : memref<32x32xf32, #tpu.memory_space<vmem>>, vector<32x32xf32>
      %cst_206 = arith.constant dense<0.000000e+00> : vector<2x32xf32>
      %261 = tpu.matmul %259, %260, %cst_206 {dimension_numbers = #tpu.dot_dimension_numbers<[1], [0], [0], [1], [0, 0, 1, 1], [], []>} : vector<2x32xf32>, vector<32x32xf32>, vector<2x32xf32> -> vector<2x32xf32>
      %c0_207 = arith.constant 0 : index
      %c0_208 = arith.constant 0 : index
      %262 = vector.load %arg24[%c0_207, %c0_208] : memref<1x32xf32, #tpu.memory_space<vmem>>, vector<1x32xf32>
      %263 = vector.broadcast %262 : vector<1x32xf32> to vector<2x32xf32>
      %264 = arith.addf %261, %263 : vector<2x32xf32>
      %c0_209 = arith.constant 0 : index
      %c0_210 = arith.constant 0 : index
      %265 = vector.load %arg25[%c0_209, %c0_210] : memref<32x4xf32, #tpu.memory_space<vmem>>, vector<32x4xf32>
      %cst_211 = arith.constant dense<0.000000e+00> : vector<2x4xf32>
      %266 = tpu.matmul %264, %265, %cst_211 {dimension_numbers = #tpu.dot_dimension_numbers<[1], [0], [0], [1], [0, 0, 1, 1], [], []>} : vector<2x32xf32>, vector<32x4xf32>, vector<2x4xf32> -> vector<2x4xf32>
      %c0_212 = arith.constant 0 : index
      %c0_213 = arith.constant 0 : index
      %267 = vector.load %arg26[%c0_212, %c0_213] : memref<1x4xf32, #tpu.memory_space<vmem>>, vector<1x4xf32>
      %268 = vector.broadcast %267 : vector<1x4xf32> to vector<2x4xf32>
      %269 = arith.addf %266, %268 : vector<2x4xf32>
      %c0_214 = arith.constant 0 : index
      %c0_215 = arith.constant 0 : index
      %270 = vector.load %arg32[%c0_214, %c0_215] : memref<2x4xf32, #tpu.memory_space<vmem>>, vector<2x4xf32>
      tpu.vector_store %arg32[%c0_214, %c0_215], %269 {strides = array<i32>} : memref<2x4xf32, #tpu.memory_space<vmem>>, vector<2x4xf32>,
      %c0_216 = arith.constant 0 : index
      %271 = memref.load %arg1[%c0_216] : memref<8xi32, #tpu.memory_space<smem>>
      %272 = arith.index_cast %271 : i32 to index
      %c0_217 = arith.constant 0 : index
      %273 = vector.load %arg34[%272, %c0_217] : memref<16x32xf32, #tpu.memory_space<vmem>>, vector<1x32xf32>
      %c0_218 = arith.constant 0 : index
      %c0_219 = arith.constant 0 : index
      %274 = vector.load %arg36[%c0_218, %c0_219] : memref<8x32xf32, #tpu.memory_space<vmem>>, vector<1x32xf32>
      tpu.vector_store %arg36[%c0_218, %c0_219], %273 {strides = array<i32>} : memref<8x32xf32, #tpu.memory_space<vmem>>, vector<1x32xf32>,
      %c1_220 = arith.constant 1 : index
      %275 = memref.load %arg1[%c1_220] : memref<8xi32, #tpu.memory_space<smem>>
      %276 = arith.index_cast %275 : i32 to index
      %c0_221 = arith.constant 0 : index
      %277 = vector.load %arg34[%276, %c0_221] : memref<16x32xf32, #tpu.memory_space<vmem>>, vector<1x32xf32>
      %c1_222 = arith.constant 1 : index
      %c0_223 = arith.constant 0 : index
      %278 = vector.load %arg36[%c1_222, %c0_223] : memref<8x32xf32, #tpu.memory_space<vmem>>, vector<1x32xf32>
      tpu.vector_store %arg36[%c1_222, %c0_223], %277 {strides = array<i32>} : memref<8x32xf32, #tpu.memory_space<vmem>>, vector<1x32xf32>,
      %c2_224 = arith.constant 2 : index
      %279 = memref.load %arg1[%c2_224] : memref<8xi32, #tpu.memory_space<smem>>
      %280 = arith.index_cast %279 : i32 to index
      %c0_225 = arith.constant 0 : index
      %281 = vector.load %arg34[%280, %c0_225] : memref<16x32xf32, #tpu.memory_space<vmem>>, vector<1x32xf32>
      %c2_226 = arith.constant 2 : index
      %c0_227 = arith.constant 0 : index
      %282 = vector.load %arg36[%c2_226, %c0_227] : memref<8x32xf32, #tpu.memory_space<vmem>>, vector<1x32xf32>
      tpu.vector_store %arg36[%c2_226, %c0_227], %281 {strides = array<i32>} : memref<8x32xf32, #tpu.memory_space<vmem>>, vector<1x32xf32>,
      %c3_228 = arith.constant 3 : index
      %283 = memref.load %arg1[%c3_228] : memref<8xi32, #tpu.memory_space<smem>>
      %284 = arith.index_cast %283 : i32 to index
      %c0_229 = arith.constant 0 : index
      %285 = vector.load %arg34[%284, %c0_229] : memref<16x32xf32, #tpu.memory_space<vmem>>, vector<1x32xf32>
      %c3_230 = arith.constant 3 : index
      %c0_231 = arith.constant 0 : index
      %286 = vector.load %arg36[%c3_230, %c0_231] : memref<8x32xf32, #tpu.memory_space<vmem>>, vector<1x32xf32>
      tpu.vector_store %arg36[%c3_230, %c0_231], %285 {strides = array<i32>} : memref<8x32xf32, #tpu.memory_space<vmem>>, vector<1x32xf32>,
      %c4 = arith.constant 4 : index
      %287 = memref.load %arg1[%c4] : memref<8xi32, #tpu.memory_space<smem>>
      %288 = arith.index_cast %287 : i32 to index
      %c0_232 = arith.constant 0 : index
      %289 = vector.load %arg34[%288, %c0_232] : memref<16x32xf32, #tpu.memory_space<vmem>>, vector<1x32xf32>
      %c4_233 = arith.constant 4 : index
      %c0_234 = arith.constant 0 : index
      %290 = vector.load %arg36[%c4_233, %c0_234] : memref<8x32xf32, #tpu.memory_space<vmem>>, vector<1x32xf32>
      tpu.vector_store %arg36[%c4_233, %c0_234], %289 {strides = array<i32>} : memref<8x32xf32, #tpu.memory_space<vmem>>, vector<1x32xf32>,
      %c5 = arith.constant 5 : index
      %291 = memref.load %arg1[%c5] : memref<8xi32, #tpu.memory_space<smem>>
      %292 = arith.index_cast %291 : i32 to index
      %c0_235 = arith.constant 0 : index
      %293 = vector.load %arg34[%292, %c0_235] : memref<16x32xf32, #tpu.memory_space<vmem>>, vector<1x32xf32>
      %c5_236 = arith.constant 5 : index
      %c0_237 = arith.constant 0 : index
      %294 = vector.load %arg36[%c5_236, %c0_237] : memref<8x32xf32, #tpu.memory_space<vmem>>, vector<1x32xf32>
      tpu.vector_store %arg36[%c5_236, %c0_237], %293 {strides = array<i32>} : memref<8x32xf32, #tpu.memory_space<vmem>>, vector<1x32xf32>,
      %c6 = arith.constant 6 : index
      %295 = memref.load %arg1[%c6] : memref<8xi32, #tpu.memory_space<smem>>
      %296 = arith.index_cast %295 : i32 to index
      %c0_238 = arith.constant 0 : index
      %297 = vector.load %arg34[%296, %c0_238] : memref<16x32xf32, #tpu.memory_space<vmem>>, vector<1x32xf32>
      %c6_239 = arith.constant 6 : index
      %c0_240 = arith.constant 0 : index
      %298 = vector.load %arg36[%c6_239, %c0_240] : memref<8x32xf32, #tpu.memory_space<vmem>>, vector<1x32xf32>
      tpu.vector_store %arg36[%c6_239, %c0_240], %297 {strides = array<i32>} : memref<8x32xf32, #tpu.memory_space<vmem>>, vector<1x32xf32>,
      %c7 = arith.constant 7 : index
      %299 = memref.load %arg1[%c7] : memref<8xi32, #tpu.memory_space<smem>>
      %300 = arith.index_cast %299 : i32 to index
      %c0_241 = arith.constant 0 : index
      %301 = vector.load %arg34[%300, %c0_241] : memref<16x32xf32, #tpu.memory_space<vmem>>, vector<1x32xf32>
      %c7_242 = arith.constant 7 : index
      %c0_243 = arith.constant 0 : index
      %302 = vector.load %arg36[%c7_242, %c0_243] : memref<8x32xf32, #tpu.memory_space<vmem>>, vector<1x32xf32>
      tpu.vector_store %arg36[%c7_242, %c0_243], %301 {strides = array<i32>} : memref<8x32xf32, #tpu.memory_space<vmem>>, vector<1x32xf32>,
      %c0_244 = arith.constant 0 : index
      %c0_245 = arith.constant 0 : index
      %303 = vector.load %arg36[%c0_244, %c0_245] : memref<8x32xf32, #tpu.memory_space<vmem>>, vector<8x32xf32>
      %c0_246 = arith.constant 0 : index
      %c0_247 = arith.constant 0 : index
      %304 = vector.load %arg27[%c0_246, %c0_247] : memref<32x32xf32, #tpu.memory_space<vmem>>, vector<32x32xf32>
      %cst_248 = arith.constant dense<0.000000e+00> : vector<8x32xf32>
      %305 = tpu.matmul %303, %304, %cst_248 {dimension_numbers = #tpu.dot_dimension_numbers<[1], [0], [0], [1], [0, 0, 1, 1], [], []>} : vector<8x32xf32>, vector<32x32xf32>, vector<8x32xf32> -> vector<8x32xf32>
      %c0_249 = arith.constant 0 : index
      %c0_250 = arith.constant 0 : index
      %306 = vector.load %arg28[%c0_249, %c0_250] : memref<1x32xf32, #tpu.memory_space<vmem>>, vector<1x32xf32>
      %307 = vector.broadcast %306 : vector<1x32xf32> to vector<8x32xf32>
      %308 = arith.addf %305, %307 : vector<8x32xf32>
      %c0_251 = arith.constant 0 : index
      %c0_252 = arith.constant 0 : index
      %309 = vector.load %arg29[%c0_251, %c0_252] : memref<1x32xf32, #tpu.memory_space<vmem>>, vector<1x32xf32>
      %c0_253 = arith.constant 0 : index
      %c0_254 = arith.constant 0 : index
      %310 = vector.load %arg30[%c0_253, %c0_254] : memref<1x32xf32, #tpu.memory_space<vmem>>, vector<1x32xf32>
      %cst_255 = arith.constant dense<0.000000e+00> : vector<8xf32>
      %311 = vector.multi_reduction <add>, %308, %cst_255 [1] : vector<8x32xf32> to vector<8xf32>
      %312 = vector.shape_cast %311 : vector<8xf32> to vector<8x1xf32>
      %cst_256 = arith.constant 3.200000e+01 : f32
      %313 = vector.broadcast %cst_256 : f32 to vector<8x1xf32>
      %314 = arith.divf %312, %313 : vector<8x1xf32>
      %315 = vector.broadcast %314 : vector<8x1xf32> to vector<8x32xf32>
      %316 = arith.subf %308, %315 : vector<8x32xf32>
      %317 = arith.mulf %316, %316 : vector<8x32xf32>
      %cst_257 = arith.constant dense<0.000000e+00> : vector<8xf32>
      %318 = vector.multi_reduction <add>, %317, %cst_257 [1] : vector<8x32xf32> to vector<8xf32>
      %319 = vector.shape_cast %318 : vector<8xf32> to vector<8x1xf32>
      %cst_258 = arith.constant 3.200000e+01 : f32
      %320 = vector.broadcast %cst_258 : f32 to vector<8x1xf32>
      %321 = arith.divf %319, %320 : vector<8x1xf32>
      %322 = vector.broadcast %314 : vector<8x1xf32> to vector<8x32xf32>
      %323 = arith.subf %308, %322 : vector<8x32xf32>
      %cst_259 = arith.constant 9.99999974E-6 : f32
      %324 = vector.broadcast %cst_259 : f32 to vector<8x1xf32>
      %325 = arith.addf %321, %324 : vector<8x1xf32>
      %326 = math.rsqrt %325 : vector<8x1xf32>
      %327 = vector.broadcast %326 : vector<8x1xf32> to vector<8x32xf32>
      %328 = arith.mulf %323, %327 : vector<8x32xf32>
      %329 = vector.broadcast %309 : vector<1x32xf32> to vector<8x32xf32>
      %330 = arith.mulf %328, %329 : vector<8x32xf32>
      %331 = vector.broadcast %310 : vector<1x32xf32> to vector<8x32xf32>
      %332 = arith.addf %330, %331 : vector<8x32xf32>
      %c0_260 = arith.constant 0 : index
      %c0_261 = arith.constant 0 : index
      %333 = vector.load %arg31[%c0_260, %c0_261] : memref<32x64xf32, #tpu.memory_space<vmem>>, vector<32x64xf32>
      %cst_262 = arith.constant dense<0.000000e+00> : vector<8x64xf32>
      %334 = tpu.matmul %332, %333, %cst_262 {dimension_numbers = #tpu.dot_dimension_numbers<[1], [0], [0], [1], [0, 0, 1, 1], [], []>} : vector<8x32xf32>, vector<32x64xf32>, vector<8x64xf32> -> vector<8x64xf32>
      %c0_263 = arith.constant 0 : index
      %c0_264 = arith.constant 0 : index
      %335 = vector.load %arg33[%c0_263, %c0_264] : memref<8x64xf32, #tpu.memory_space<vmem>>, vector<8x64xf32>
      tpu.vector_store %arg33[%c0_263, %c0_264], %334 {strides = array<i32>} : memref<8x64xf32, #tpu.memory_space<vmem>>, vector<8x64xf32>,
    } else {
    }
    return
  }
  func.func @transform_0(%arg0: i32, %arg1: memref<8xi32, #tpu.memory_space<smem>>) -> (i32, i32) {
    %c0_i32 = arith.constant 0 : i32
    %c0_i32_0 = arith.constant 0 : i32
    %c0_i32_1 = arith.constant 0 : i32
    return %c0_i32, %c0_i32_0 : i32, i32
  }
  func.func @transform_1(%arg0: i32, %arg1: memref<8xi32, #tpu.memory_space<smem>>) -> (i32, i32) {
    %c0_i32 = arith.constant 0 : i32
    %c0_i32_0 = arith.constant 0 : i32
    %c0_i32_1 = arith.constant 0 : i32
    return %c0_i32, %c0_i32_0 : i32, i32
  }
  func.func @transform_2(%arg0: i32, %arg1: memref<8xi32, #tpu.memory_space<smem>>) -> (i32, i32) {
    %c0_i32 = arith.constant 0 : i32
    %c0_i32_0 = arith.constant 0 : i32
    %c0_i32_1 = arith.constant 0 : i32
    return %c0_i32, %c0_i32_0 : i32, i32
  }
  func.func @transform_3(%arg0: i32, %arg1: memref<8xi32, #tpu.memory_space<smem>>) -> (i32, i32) {
    %c0_i32 = arith.constant 0 : i32
    %c0_i32_0 = arith.constant 0 : i32
    %c0_i32_1 = arith.constant 0 : i32
    return %c0_i32, %c0_i32_0 : i32, i32
  }
  func.func @transform_4(%arg0: i32, %arg1: memref<8xi32, #tpu.memory_space<smem>>) -> (i32, i32) {
    %c0_i32 = arith.constant 0 : i32
    %c0_i32_0 = arith.constant 0 : i32
    %c0_i32_1 = arith.constant 0 : i32
    return %c0_i32, %c0_i32_0 : i32, i32
  }
  func.func @transform_5(%arg0: i32, %arg1: memref<8xi32, #tpu.memory_space<smem>>) -> (i32, i32, i32, i32) {
    %c0_i32 = arith.constant 0 : i32
    %c0_i32_0 = arith.constant 0 : i32
    %c0_i32_1 = arith.constant 0 : i32
    %c0_i32_2 = arith.constant 0 : i32
    return %arg0, %c0_i32, %c0_i32_0, %c0_i32_1 : i32, i32, i32, i32
  }
  func.func @transform_6(%arg0: i32, %arg1: memref<8xi32, #tpu.memory_space<smem>>) -> (i32, i32, i32, i32) {
    %c0_i32 = arith.constant 0 : i32
    %c0_i32_0 = arith.constant 0 : i32
    %c0_i32_1 = arith.constant 0 : i32
    %c0_i32_2 = arith.constant 0 : i32
    return %arg0, %c0_i32, %c0_i32_0, %c0_i32_1 : i32, i32, i32, i32
  }
  func.func @transform_7(%arg0: i32, %arg1: memref<8xi32, #tpu.memory_space<smem>>) -> (i32, i32, i32, i32) {
    %c0_i32 = arith.constant 0 : i32
    %c0_i32_0 = arith.constant 0 : i32
    %c0_i32_1 = arith.constant 0 : i32
    %c0_i32_2 = arith.constant 0 : i32
    return %arg0, %c0_i32, %c0_i32_0, %c0_i32_1 : i32, i32, i32, i32
  }
  func.func @transform_8(%arg0: i32, %arg1: memref<8xi32, #tpu.memory_space<smem>>) -> (i32, i32, i32, i32) {
    %c0_i32 = arith.constant 0 : i32
    %c0_i32_0 = arith.constant 0 : i32
    %c0_i32_1 = arith.constant 0 : i32
    %c0_i32_2 = arith.constant 0 : i32
    return %arg0, %c0_i32, %c0_i32_0, %c0_i32_1 : i32, i32, i32, i32
  }
  func.func @transform_9(%arg0: i32, %arg1: memref<8xi32, #tpu.memory_space<smem>>) -> (i32, i32, i32, i32) {
    %c0_i32 = arith.constant 0 : i32
    %c0_i32_0 = arith.constant 0 : i32
    %c0_i32_1 = arith.constant 0 : i32
    %c0_i32_2 = arith.constant 0 : i32
    return %arg0, %c0_i32, %c0_i32_0, %c0_i32_1 : i32, i32, i32, i32
  }
  func.func @transform_10(%arg0: i32, %arg1: memref<8xi32, #tpu.memory_space<smem>>) -> (i32, i32, i32, i32) {
    %c0_i32 = arith.constant 0 : i32
    %c0_i32_0 = arith.constant 0 : i32
    %c0_i32_1 = arith.constant 0 : i32
    %c0_i32_2 = arith.constant 0 : i32
    return %arg0, %c0_i32, %c0_i32_0, %c0_i32_1 : i32, i32, i32, i32
  }
  func.func @transform_11(%arg0: i32, %arg1: memref<8xi32, #tpu.memory_space<smem>>) -> (i32, i32, i32, i32) {
    %c0_i32 = arith.constant 0 : i32
    %c0_i32_0 = arith.constant 0 : i32
    %c0_i32_1 = arith.constant 0 : i32
    %c0_i32_2 = arith.constant 0 : i32
    return %arg0, %c0_i32, %c0_i32_0, %c0_i32_1 : i32, i32, i32, i32
  }
  func.func @transform_12(%arg0: i32, %arg1: memref<8xi32, #tpu.memory_space<smem>>) -> (i32, i32, i32) {
    %c0_i32 = arith.constant 0 : i32
    %c0_i32_0 = arith.constant 0 : i32
    %c0_i32_1 = arith.constant 0 : i32
    return %arg0, %c0_i32, %c0_i32_0 : i32, i32, i32
  }
  func.func @transform_13(%arg0: i32, %arg1: memref<8xi32, #tpu.memory_space<smem>>) -> (i32, i32, i32) {
    %c0_i32 = arith.constant 0 : i32
    %c0_i32_0 = arith.constant 0 : i32
    %c0_i32_1 = arith.constant 0 : i32
    return %arg0, %c0_i32, %c0_i32_0 : i32, i32, i32
  }
  func.func @transform_14(%arg0: i32, %arg1: memref<8xi32, #tpu.memory_space<smem>>) -> (i32, i32, i32) {
    %c0_i32 = arith.constant 0 : i32
    %c0_i32_0 = arith.constant 0 : i32
    %c0_i32_1 = arith.constant 0 : i32
    return %arg0, %c0_i32, %c0_i32_0 : i32, i32, i32
  }
  func.func @transform_15(%arg0: i32, %arg1: memref<8xi32, #tpu.memory_space<smem>>) -> (i32, i32, i32) {
    %c0_i32 = arith.constant 0 : i32
    %c0_i32_0 = arith.constant 0 : i32
    %c0_i32_1 = arith.constant 0 : i32
    return %arg0, %c0_i32, %c0_i32_0 : i32, i32, i32
  }
  func.func @transform_16(%arg0: i32, %arg1: memref<8xi32, #tpu.memory_space<smem>>) -> (i32, i32, i32) {
    %c0_i32 = arith.constant 0 : i32
    %c0_i32_0 = arith.constant 0 : i32
    %c0_i32_1 = arith.constant 0 : i32
    return %arg0, %c0_i32, %c0_i32_0 : i32, i32, i32
  }
  func.func @transform_17(%arg0: i32, %arg1: memref<8xi32, #tpu.memory_space<smem>>) -> (i32, i32, i32) {
    %c0_i32 = arith.constant 0 : i32
    %c0_i32_0 = arith.constant 0 : i32
    %c0_i32_1 = arith.constant 0 : i32
    return %arg0, %c0_i32, %c0_i32_0 : i32, i32, i32
  }
  func.func @transform_18(%arg0: i32, %arg1: memref<8xi32, #tpu.memory_space<smem>>) -> (i32, i32, i32) {
    %c0_i32 = arith.constant 0 : i32
    %c0_i32_0 = arith.constant 0 : i32
    %c0_i32_1 = arith.constant 0 : i32
    return %arg0, %c0_i32, %c0_i32_0 : i32, i32, i32
  }
  func.func @transform_19(%arg0: i32, %arg1: memref<8xi32, #tpu.memory_space<smem>>) -> (i32, i32, i32) {
    %c0_i32 = arith.constant 0 : i32
    %c0_i32_0 = arith.constant 0 : i32
    %c0_i32_1 = arith.constant 0 : i32
    return %arg0, %c0_i32, %c0_i32_0 : i32, i32, i32
  }
  func.func @transform_20(%arg0: i32, %arg1: memref<8xi32, #tpu.memory_space<smem>>) -> (i32, i32, i32) {
    %c0_i32 = arith.constant 0 : i32
    %c0_i32_0 = arith.constant 0 : i32
    %c0_i32_1 = arith.constant 0 : i32
    return %arg0, %c0_i32, %c0_i32_0 : i32, i32, i32
  }
  func.func @transform_21(%arg0: i32, %arg1: memref<8xi32, #tpu.memory_space<smem>>) -> (i32, i32) {
    %c0_i32 = arith.constant 0 : i32
    %c0_i32_0 = arith.constant 0 : i32
    %c0_i32_1 = arith.constant 0 : i32
    return %c0_i32, %c0_i32_0 : i32, i32
  }
  func.func @transform_22(%arg0: i32, %arg1: memref<8xi32, #tpu.memory_space<smem>>) -> (i32, i32) {
    %c0_i32 = arith.constant 0 : i32
    %c0_i32_0 = arith.constant 0 : i32
    %c0_i32_1 = arith.constant 0 : i32
    return %c0_i32, %c0_i32_0 : i32, i32
  }
  func.func @transform_23(%arg0: i32, %arg1: memref<8xi32, #tpu.memory_space<smem>>) -> (i32, i32) {
    %c0_i32 = arith.constant 0 : i32
    %c0_i32_0 = arith.constant 0 : i32
    %c0_i32_1 = arith.constant 0 : i32
    return %c0_i32, %c0_i32_0 : i32, i32
  }
  func.func @transform_24(%arg0: i32, %arg1: memref<8xi32, #tpu.memory_space<smem>>) -> (i32, i32) {
    %c0_i32 = arith.constant 0 : i32
    %c0_i32_0 = arith.constant 0 : i32
    %c0_i32_1 = arith.constant 0 : i32
    return %c0_i32, %c0_i32_0 : i32, i32
  }
  func.func @transform_25(%arg0: i32, %arg1: memref<8xi32, #tpu.memory_space<smem>>) -> (i32, i32) {
    %c0_i32 = arith.constant 0 : i32
    %c0_i32_0 = arith.constant 0 : i32
    %c0_i32_1 = arith.constant 0 : i32
    return %c0_i32, %c0_i32_0 : i32, i32
  }
  func.func @transform_26(%arg0: i32, %arg1: memref<8xi32, #tpu.memory_space<smem>>) -> (i32, i32) {
    %c0_i32 = arith.constant 0 : i32
    %c0_i32_0 = arith.constant 0 : i32
    %c0_i32_1 = arith.constant 0 : i32
    return %c0_i32, %c0_i32_0 : i32, i32
  }
  func.func @transform_27(%arg0: i32, %arg1: memref<8xi32, #tpu.memory_space<smem>>) -> (i32, i32) {
    %c0_i32 = arith.constant 0 : i32
    %c0_i32_0 = arith.constant 0 : i32
    %c0_i32_1 = arith.constant 0 : i32
    return %c0_i32, %c0_i32_0 : i32, i32
  }
  func.func @transform_28(%arg0: i32, %arg1: memref<8xi32, #tpu.memory_space<smem>>) -> (i32, i32) {
    %c0_i32 = arith.constant 0 : i32
    %c0_i32_0 = arith.constant 0 : i32
    %c0_i32_1 = arith.constant 0 : i32
    return %c0_i32, %c0_i32_0 : i32, i32
  }
  func.func @transform_29(%arg0: i32, %arg1: memref<8xi32, #tpu.memory_space<smem>>) -> (i32, i32) {
    %c0_i32 = arith.constant 0 : i32
    %c0_i32_0 = arith.constant 0 : i32
    %c0_i32_1 = arith.constant 0 : i32
    return %c0_i32, %c0_i32_0 : i32, i32
  }
  func.func @transform_30(%arg0: i32, %arg1: memref<8xi32, #tpu.memory_space<smem>>) -> (i32, i32) {
    %c0_i32 = arith.constant 0 : i32
    %c0_i32_0 = arith.constant 0 : i32
    %c0_i32_1 = arith.constant 0 : i32
    return %c0_i32, %c0_i32_0 : i32, i32
  }
  func.func @transform_31(%arg0: i32, %arg1: memref<8xi32, #tpu.memory_space<smem>>) -> (i32, i32) {
    %c0_i32 = arith.constant 0 : i32
    %c0_i32_0 = arith.constant 0 : i32
    %c0_i32_1 = arith.constant 0 : i32
    return %c0_i32, %c0_i32_0 : i32, i32
  }
}

</mosaic_0001>

<bundles_post_ra>
// kernel: roberta_mlm_forward.1
= control target key start
LH: loop header
LB: loop body
LE: loop exit
PB: predicated region body
PF: predicated region fallthrough
CT: control target
= control target key end

     0   :  { %s3245_s6 = smov 1   ;;  %s3246_s10 = smov 2   ;;  %s3855_s0 = inlined_call_operand.smem [shape: u32[33], index: -1, kind: input, shape index: {}] }
   0x1   :  { %s3290_s5 = sld [smem:[%s3855_s0]]   ;;  %s3247_s14 = smov 3  }
   0x2   :  { %s3295_s9 = sld [smem:[%s3855_s0 + %s3245_s6]]   ;;  %s3248_s18 = smov 4  }
   0x3   :  { %s3300_s13 = sld [smem:[%s3855_s0 + %s3246_s10]]   ;;  %s3249_s22 = smov 5  }
   0x4   :  { %s3305_s17 = sld [smem:[%s3855_s0 + %s3247_s14]]   ;;  %s3250_s26 = smov 6  }
   0x5   :  { %s3310_s21 = sld [smem:[%s3855_s0 + %s3248_s18]]   ;;  %s3251_s30 = smov 7  }
   0x6   :  { %s3315_s25 = sld [smem:[%s3855_s0 + %s3249_s22]]   ;;  %s3252_s4 = smov 8  }
   0x7   :  { %s3320_s29 = sld [smem:[%s3855_s0 + %s3250_s26]]   ;;  %s3253_s10 = smov 9  }
   0x8   :  { %3870 = sst [smem:[#allocation14_spill]] %s3295_s9  ;;  %s3254_s15 = smov 10  }
   0x9   :  { %3871 = sst [smem:[#allocation15_spill]] %s3300_s13  ;;  %s3255_s20 = smov 11  }
   0xa   :  { %3872 = sst [smem:[#allocation16_spill]] %s3305_s17  ;;  %s3256_s26 = smov 12  }
   0xb   :  { %3873 = sst [smem:[#allocation17_spill]] %s3310_s21  ;;  %s3257_s1 = smov 13  }
   0xc   :  { %3874 = sst [smem:[#allocation18_spill]] %s3315_s25  ;;  %s3258_s7 = smov 14  }
   0xd   :  { %3875 = sst [smem:[#allocation19_spill]] %s3320_s29  ;;  %s3260_s22 = smov 16  }
   0xe   :  { %s3325_s3 = sld [smem:[%s3855_s0 + %s3251_s30]]   ;;  %s3261_s28 = smov 17  }
   0xf   :  { %s3330_s8 = sld [smem:[%s3855_s0 + %s3252_s4]]   ;;  %s3275_s18 = smov 31  }
  0x10   :  { %s3335_s14 = sld [smem:[%s3855_s0 + %s3253_s10]]  }
  0x11   :  { %s3340_s19 = sld [smem:[%s3855_s0 + %s3254_s15]]   ;;  %s3259_s15 = smov 15  }
  0x12   :  { %s3345_s24 = sld [smem:[%s3855_s0 + %s3255_s20]]  }
  0x13   :  { %s3350_s30 = sld [smem:[%s3855_s0 + %s3256_s26]]   ;;  %s3276_s26 = smov 32  }
  0x14   :  { %3876 = sst [smem:[#allocation20_spill]] %s3325_s3 }
  0x15   :  { %3877 = sst [smem:[#allocation21_spill]] %s3330_s8 }
  0x16   :  { %3878 = sst [smem:[#allocation22_spill]] %s3335_s14 }
  0x17   :  { %3879 = sst [smem:[#allocation23_spill]] %s3340_s19 }
  0x18   :  { %s3355_s6 = sld [smem:[%s3855_s0 + %s3257_s1]]  }
  0x19   :  { %s3360_s12 = sld [smem:[%s3855_s0 + %s3258_s7]]   ;;  %s3262_s7 = smov 18  }
  0x1a   :  { %s3365_s20 = sld [smem:[%s3855_s0 + %s3259_s15]]   ;;  %s3263_s15 = smov 19  }
  0x1b   :  { %s3370_s27 = sld [smem:[%s3855_s0 + %s3260_s22]]   ;;  %s3264_s22 = smov 20  }
  0x1c   :  { %s3375_s4 = sld [smem:[%s3855_s0 + %s3261_s28]]   ;;  %s3265_s28 = smov 21  }
  0x1d   :  { %s3380_s17 = sld [smem:[%s3855_s0 + %s3262_s7]]   ;;  %s3266_s7 = smov 22  }
  0x1e   :  { %s3385_s25 = sld [smem:[%s3855_s0 + %s3263_s15]]   ;;  %s3267_s15 = smov 23  }
  0x1f   :  { %s3390_s21 = sld [smem:[%s3855_s0 + %s3264_s22]]   ;;  %s3268_s22 = smov 24  }
  0x20   :  { %s3395_s13 = sld [smem:[%s3855_s0 + %s3265_s28]]   ;;  %s3269_s28 = smov 25  }
  0x21   :  { %s3400_s9 = sld [smem:[%s3855_s0 + %s3266_s7]]   ;;  %s3270_s7 = smov 26  }
  0x22   :  { %s3405_s23 = sld [smem:[%s3855_s0 + %s3267_s15]]   ;;  %s3271_s15 = smov 27  }
  0x23   :  { %s3410_s1 = sld [smem:[%s3855_s0 + %s3268_s22]]  }
  0x24   :  { %3880 = sst [smem:[#allocation24_spill]] %s3385_s25 }
  0x25   :  { %3881 = sst [smem:[#allocation25_spill]] %s3390_s21  ;;  %s3272_s21 = smov 28  }
  0x26   :  { %3882 = sst [smem:[#allocation26_spill]] %s3395_s13 }
  0x27   :  { %3883 = sst [smem:[#allocation27_spill]] %s3400_s9 }
  0x28   :  { %3884 = sst [smem:[#allocation28_spill]] %s3405_s23 }
  0x29   :  { %3885 = sst [smem:[#allocation29_spill]] %s3410_s1  ;;  %s3163_s1 = scalar_lea.vmem %s3290_s5, 1 }
  0x2a   :  { %s3415_s10 = sld [smem:[%s3855_s0 + %s3269_s28]]   ;;  %s3273_s28 = smov 29  }
  0x2b   :  { %s3420_s16 = sld [smem:[%s3855_s0 + %s3270_s7]]   ;;  %s3274_s7 = smov 30  }
  0x2c   :  { %s3425_s25 = sld [smem:[%s3855_s0 + %s3271_s15]]   ;;  %s72_s15 = sshll.u32 %s3290_s5, 4  ;;  %s73_s15 = int_to_ptr.vmem [resolvable:$true] %s72_s15 }
  0x2d   :  { %s3430_s13 = sld [smem:[%s3855_s0 + %s3272_s21]]  }
  0x2e   :  { %s3435_s9 = sld [smem:[%s3855_s0 + %s3273_s28]]   ;;  %s3159_s28 = sshra.s32 %s73_s15, 4  ;;  %s3160_s28 = int_to_ptr.vmem [resolvable:$true] %s3159_s28 }
  0x2f   :  { %s3440_s23 = sld [smem:[%s3855_s0 + %s3274_s7]]   ;;  %s3161_s2 = scalar_lea.vmem %s3160_s28, 1 }
  0x30   :  { %3886 = sst [smem:[#allocation30_spill]] %s3415_s10  ;;  %p3162_p0 = scmp.ne.s32.totalorder %s3160_s28, %s3161_s2 }
  0x31   :  { %3887 = sst [smem:[#allocation31_spill]] %s3420_s16  ;;  %p3164_p1 = scmp.lt.s32.totalorder %s3160_s28, %s3290_s5 }
  0x32   :  { %3888 = sst [smem:[#allocation32_spill]] %s3425_s25  ;;  %p3165_p2 = scmp.lt.s32.totalorder %s3163_s1, %s3161_s2 }
  0x33   :  { %3889 = sst [smem:[#allocation33_spill]] %s3430_s13 }
  0x34   :  { %3890 = sst [smem:[#allocation34_spill]] %s3435_s9  ;;  %p3166_p3 = por %p3165_p2, %p3164_p1 }
  0x35   :  { %3891 = sst [smem:[#allocation35_spill]] %s3440_s23 }
  0x36   :  { %s3446_s21 = sld [smem:[%s3855_s0 + %s3275_s18]]   ;;  %p3167_p4 = pnand %p3166_p3, %p3162_p0 }
  0x37   :  { %s3451_s10 = sld [smem:[%s3855_s0 + %s3276_s26]]  }
  0x3c   :  { %3892 = sst [smem:[#allocation36_spill]] %s3446_s21 }
  0x3d   :  { %3893 = sst [smem:[#allocation37_spill]] %s3451_s10 }
  0x3e   :  { %3170 = shalt.err (!%p3167_p4)  }
  0x3f   :  { %s3277_s25 = smov [#allocation6]  }
  0x40   :  { %75 = dma.vmem_to_smem %s73_s15, 16, %s3277_s25, [#allocation5] }
  0x41   :  { %3231 = dma.done.wait [#allocation5], 16 }
  0x42   :  { %3232 = vsyncadd [#allocation5], 4294967280 }
  0x43   :  { %78 = sfence }
  0x44   :  { %79 = vsyncpa [#allocation8], 0 }
  0x45   :  { %80 = vsyncpa [#allocation10], 0  ;;  %s3455_s16 = smov 0  }
  0x46 LB: > { %3894 = sst [smem:[#allocation38_spill]] %s3243_s16  ;;  %s3461_s0 = sadd.s32 4294967295, %s3243_s16   ;;  %s3243_s16 = sphi %s3455_s16, %s86_s16  }
  0x47   : > { %3895 = sst [smem:[#allocation39_spill]] %s3461_s0  ;;  %p2871_p5 = scmp.ge.s32.totalorder %s3243_s16, 1 }
  0x48   : > { %p1007_p6 = scmp.lt.s32.totalorder %s3243_s16, 3 }
  0x4a   : > { %p1008_p7 = pnand %p2871_p5, %p1007_p6 }
  0x4c   : > { %1011 = sbr.rel (%p1008_p7) target bundleno = 4112 (0x1010), region = 140 }
  0x51   : > { %s3896_s29 = sld [smem:[#allocation19_spill]]  ;;  %p1140_p8 = scmp.lt.s32.totalorder %s3461_s0, 1 }
  0x52   : > { %s3897_s3 = sld [smem:[#allocation20_spill]] }
  0x53   : > { %s3898_s8 = sld [smem:[#allocation21_spill]] }
  0x54   : > { %s3899_s14 = sld [smem:[#allocation22_spill]] }
  0x55   : > { %s3900_s19 = sld [smem:[#allocation23_spill]] }
  0x56   : > { %s3467_s5 = scalar_select %p1140_p8, %s3461_s0, 1 }
  0x57   : > { %s3901_s7 = sld [smem:[#allocation24_spill]] }
  0x58   : > { %s3012_s13 = sshll.u32 %s3467_s5, 7  ;;  %s2874_s11 = sshll.u32 %s3467_s5, 2 }
  0x59   : > { %s3902_s15 = sld [smem:[#allocation25_spill]]  ;;  %s3472_s18 = scalar_lea.vmem %s3896_s29, %s3012_s13 }
  0x5a   : > { %3903 = sst [smem:[#allocation40_spill]] %s3472_s18  ;;  %s3475_s26 = scalar_lea.vmem %s3897_s3, %s2874_s11 }
  0x5b   : > { %s3904_s22 = sld [smem:[#allocation26_spill]]  ;;  %s3478_s28 = scalar_lea.vmem %s3898_s8, %s3012_s13 }
  0x5c   : > { %3905 = sst [smem:[#allocation41_spill]] %s3475_s26  ;;  %s3481_s2 = scalar_lea.vmem %s3899_s14, %s2874_s11 }
  0x5d   : > { %s3484_s1 = scalar_lea.vmem %s3900_s19, %s3012_s13  ;;  %s3487_s25 = scalar_lea.vmem %s3345_s24, %s2874_s11 }
  0x5e   : > { %s3015_s16 = sshll.u32 %s3467_s5, 5  ;;  %s1174_s10 = scalar_lea.vmem %s3355_s6, %s3467_s5 }
  0x5f   : > { %s3493_s21 = scalar_lea.vmem %s3350_s30, %s3015_s16  ;;  %s1177_s9 = scalar_lea.vmem %s3360_s12, %s3467_s5 }
  0x60   : > { %s1180_s23 = scalar_lea.vmem %s3365_s20, %s3467_s5  ;;  %s3500_s29 = scalar_lea.vmem %s3370_s27, %s3015_s16 }
  0x61   : > { %s1188_s18 = scalar_lea.vmem %s3375_s4, %s3467_s5  ;;  %s3505_s0 = scalar_lea.vmem %s3380_s17, %s3012_s13 }
  0x62   : > { %s1196_s3 = scalar_lea.vmem %s3901_s7, %s3467_s5  ;;  %s1199_s8 = scalar_lea.vmem %s3902_s15, %s3467_s5 }
  0x63   : > { %s1202_s26 = scalar_lea.vmem %s3904_s22, %s3467_s5  ;;  %s3906_s14 = sld [smem:[#allocation39_spill]] }
  0x69   : > { %p2887_p9 = scmp.ne.s32.totalorder %s3906_s14, 0 }
  0x6a   : > { %s3907_s19 = sld [smem:[#allocation14_spill]] (!%p2887_p9) }
  0x6b   : > { %1206 = sbr.rel (%p2887_p9) target bundleno = 393 (0x189), region = 144  ;;  %s3908_s11 = sld [smem:[#allocation15_spill]] (!%p2887_p9) }
  0x6c   : > { %s3909_s14 = sld [smem:[#allocation17_spill]] (!%p2887_p9) }
  0x6d   : > { %s3910_s16 = sld [smem:[#allocation18_spill]] (!%p2887_p9) }
  0x70   : > { %v1207_v0 = vld [vmem:[%s3907_s19] sm:$0xff]  ;;  %vm1215_vm0 = vcmask 261120   ;;  %v1208_v3 = vld [vmem:[%s3907_s19 + $0x8] sm:$0xff]  ;;  %v3278_v8 = vmov 32.0  }
  0x71   : > { %v1209_v1 = vld [vmem:[%s3908_s11] sm:$0xff]  ;;  %v1210_v4 = vld [vmem:[%s3908_s11 + $0x8] sm:$0xff]  ;;  %3081 = vrcp.f32 %v3278_v8 }
  0x72   : > { %v1211_v2 = vadd.f32 %v1209_v1, %v1207_v0  ;;  %v1212_v6 = vadd.f32 %v1210_v4, %v1208_v3  ;;  %v3079_v39 = vld [vmem:[%s3909_s14] ss:$0 sm:$0xff] }
  0x73   : > { %v3080_v42 = vld [vmem:[%s3910_s16] ss:$0 sm:$0xff] }
  0x74   : > { %v1216_v5 = vsel %vm1215_vm0, %v1211_v2, 0.0  ;;  %v1219_v7 = vsel %vm1215_vm0, %v1212_v6, 0.0 }
  0x75   : > { %1217 = vadd.xlane.f32.xlu0 %v1216_v5 }
  0x77   : > { %v3082_v9 = vpop.eup %3081 }
  0x78   : > { %v1223_v10 = vmul.f32 32.0, %v3082_v9  ;;  %vm1227_vm1 = vweird.f32 %v3082_v9 }
  0x7a   : > { %v1224_v11 = vsub.f32 1.0, %v1223_v10 }
  0x7c   : > { %v1225_v12 = vmul.f32 %v3082_v9, %v1224_v11 }
  0x7d   : > { %1220 = vadd.xlane.f32.xlu0 %v1219_v7 }
  0x7e   : > { %v1226_v13 = vadd.f32 %v3082_v9, %v1225_v12 }
  0x80   : > { %v1228_v14 = vsel %vm1227_vm1, %v3082_v9, %v1226_v13 }
  0xe8   : > { %v1218_v15 = vpop.xlane.xlu0 %1217 }
  0xe9   : > { %v1229_v16 = vmul.f32 %v1228_v14, %v1218_v15 }
  0xeb   : > { %v1231_v17 = vsub.f32 %v1211_v2, %v1229_v16 }
  0xed   : > { %v1233_v18 = vmul.f32 %v1231_v17, %v1231_v17 }
  0xef   : > { %v1235_v19 = vsel %vm1215_vm0, %v1233_v18, 0.0 }
  0xf0   : > { %1236 = vadd.xlane.f32.xlu1 %v1235_v19  ;;  %v1221_v20 = vpop.xlane.xlu0 %1220 }
  0xf1   : > { %v1230_v21 = vmul.f32 %v1228_v14, %v1221_v20 }
  0xf3   : > { %v1232_v22 = vsub.f32 %v1212_v6, %v1230_v21 }
  0xf5   : > { %v1234_v23 = vmul.f32 %v1232_v22, %v1232_v22 }
  0xf7   : > { %v1238_v24 = vsel %vm1215_vm0, %v1234_v23, 0.0 }
  0xf8   : > { %1239 = vadd.xlane.f32.xlu1 %v1238_v24 }
 0x163   : > { %v1237_v25 = vpop.xlane.xlu1 %1236 }
 0x164   : > { %v1241_v26 = vmul.f32 %v1237_v25, %v1228_v14 }
 0x166   : > { %v1243_v27 = vadd.f32 1e-05, %v1241_v26 }
 0x168   : > { %3083 = vrsqrt.f32 %v1243_v27  ;;  %vm1251_vm3 = vweird.f32 %v1243_v27 }
 0x16b   : > { %v1240_v28 = vpop.xlane.xlu1 %1239 }
 0x16c   : > { %v1242_v29 = vmul.f32 %v1240_v28, %v1228_v14 }
 0x16e   : > { %v3084_v30 = vpop.eup %3083  ;;  %v1244_v31 = vadd.f32 1e-05, %v1242_v29 }
 0x16f   : > { %v1246_v32 = vmul.f32 %v3084_v30, %v1243_v27  ;;  %vm1252_vm2 = vweird.f32 %v3084_v30 }
 0x170   : > { %3085 = vrsqrt.f32 %v1244_v31  ;;  %vm1253_vm4 = vmor %vm1251_vm3, %vm1252_vm2  ;;  %vm1261_vm6 = vweird.f32 %v1244_v31 }
 0x171   : > { %v1247_v33 = vmul.f32 %v3084_v30, %v1246_v32 }
 0x173   : > { %v1248_v34 = vmul.f32 0.5, %v1247_v33 }
 0x175   : > { %v1249_v35 = vsub.f32 1.5, %v1248_v34 }
 0x176   : > { %v3086_v36 = vpop.eup %3085 }
 0x177   : > { %v1250_v37 = vmul.f32 %v3084_v30, %v1249_v35  ;;  %v1256_v38 = vmul.f32 %v3086_v36, %v1244_v31  ;;  %vm1262_vm5 = vweird.f32 %v3086_v36 }
 0x178   : > { %vm1263_vm7 = vmor %vm1261_vm6, %vm1262_vm5 }
 0x179   : > { %v1254_v40 = vsel %vm1253_vm4, %v3084_v30, %v1250_v37  ;;  %v1257_v41 = vmul.f32 %v3086_v36, %v1256_v38 }
 0x17a   : > { %v1265_v43 = vmul.f32 %v1254_v40, %v1231_v17 }
 0x17b   : > { %v1258_v44 = vmul.f32 0.5, %v1257_v41 }
 0x17c   : > { %v1270_v45 = vmul.f32 %v3079_v39, %v1265_v43 }
 0x17d   : > { %v1259_v46 = vsub.f32 1.5, %v1258_v44 }
 0x17e   : > { %v1275_v47 = vadd.f32 %v3080_v42, %v1270_v45 }
 0x17f   : > { %v1260_v48 = vmul.f32 %v3086_v36, %v1259_v46 }
 0x180   : > { %1277 = vst.msk [vmem:[#allocation2] sm:$0xff] %vm1215_vm0, %v1275_v47 }
 0x181   : > { %v1264_v49 = vsel %vm1263_vm7, %v3086_v36, %v1260_v48 }
 0x182   : > { %v1266_v50 = vmul.f32 %v1264_v49, %v1232_v22 }
 0x184   : > { %v1271_v51 = vmul.f32 %v3079_v39, %v1266_v50 }
 0x186   : > { %v1276_v52 = vadd.f32 %v3080_v42, %v1271_v51 }
 0x188   : > { %1278 = vst.msk [vmem:[#allocation2 + $0x8] sm:$0xff] %vm1215_vm0, %v1276_v52 }
 0x189 PF: > { %s3911_s13 = sld [smem:[#allocation40_spill]]  ;;  %v1324_v53 = vld [vmem:[%s3478_s28 + $0x18] sm:$0xff]  ;;  %v1323_v54 = vld [vmem:[%s3478_s28 + $0x10] sm:$0xff]  ;;  %v1322_v55 = vld [vmem:[%s3478_s28 + $0x8] sm:$0xff]  ;;  %vm1291_vm8 = vcmask 261120   ;;  %vm1383_vm9 = vcmask 64512  }
 0x18a   : > { %1341 = vmatpush.msra.mxu2 %v1324_v53  ;;  %v1321_v56 = vld [vmem:[%s3478_s28] sm:$0xff]  ;;  %s3912_s7 = sld [smem:[#allocation41_spill]]  ;;  %v1355_v9 = vld [vmem:[%s3484_s1 + $0x18] sm:$0xff]  ;;  %v1354_v10 = vld [vmem:[%s3484_s1 + $0x10] sm:$0xff]  ;;  %vm1423_vm10 = vcmask 130048  }
 0x18b   : > { %v3532_v59 = vld [vmem:[#allocation2] sm:$0xff]  ;;  %v1353_v11 = vld [vmem:[%s3484_s1 + $0x8] sm:$0xff]  ;;  %s3913_s15 = sld [smem:[#allocation16_spill]]  ;;  %v2910_v13 = vld [vmem:[%s3478_s28 + $0x38] sm:$0xff] }
 0x18c   : > { %1342 = vmatpush.msra.mxu2 %v1323_v54  ;;  %v3087_v0 = vld [vmem:[%s3481_s2] ss:$0 sm:$0xff]  ;;  %v2909_v14 = vld [vmem:[%s3478_s28 + $0x30] sm:$0xff]  ;;  %v2908_v15 = vld [vmem:[%s3478_s28 + $0x28] sm:$0xff] }
 0x18d   : > { %v1352_v12 = vld [vmem:[%s3484_s1] sm:$0xff]  ;;  %v2917_v52 = vld [vmem:[%s3484_s1 + $0x38] sm:$0xff]  ;;  %v2916_v53 = vld [vmem:[%s3484_s1 + $0x30] sm:$0xff] }
 0x18e   : > { %1343 = vmatpush.msra.mxu2 %v1322_v55  ;;  %v2907_v16 = vld [vmem:[%s3478_s28 + $0x20] sm:$0xff]  ;;  %v2915_v54 = vld [vmem:[%s3484_s1 + $0x28] sm:$0xff] }
 0x18f   : > { %v1286_v57 = vld [vmem:[%s3911_s13 + $0x18] sm:$0xff]  ;;  %v1285_v58 = vld [vmem:[%s3911_s13 + $0x10] sm:$0xff]  ;;  %v1284_v60 = vld [vmem:[%s3911_s13 + $0x8] sm:$0xff] }
 0x190   : > { %1310 = vmatpush.msra.mxu0 %v1286_v57  ;;  %3018 = vmatpush.msra.mxu3 %v1286_v57  ;;  %v1283_v61 = vld [vmem:[%s3911_s13] sm:$0xff]  ;;  %v3538_v62 = vld [vmem:[#allocation2 + $0x8] sm:$0xff]  ;;  %v2903_v27 = vld [vmem:[%s3911_s13 + $0x38] sm:$0xff] }
 0x191   : > { %1344 = vmatpush.msra.mxu2 %v1321_v56  ;;  %v3088_v3 = vld [vmem:[%s3912_s7] ss:$0 sm:$0xff]  ;;  %v3572_v23 = vld [vmem:[%s3913_s15 + $0x8] sm:$0xff]  ;;  %v2902_v28 = vld [vmem:[%s3911_s13 + $0x30] sm:$0xff]  ;;  %1498 = vmatpush.msra.mxu1 %v2903_v27 }
 0x192   : > { %1311 = vmatpush.msra.mxu0 %v1285_v58  ;;  %3019 = vmatpush.msra.mxu3 %v1285_v58  ;;  %v3565_v18 = vld [vmem:[%s3913_s15] sm:$0xff]  ;;  %v2901_v29 = vld [vmem:[%s3911_s13 + $0x28] sm:$0xff] }
 0x193   : > { %2890 = vmatmul.msk.f32.vlgmr.msra.gmra.mxu2 %vm1291_vm8, %v3532_v59  ;;  %1499 = vmatpush.msra.mxu1 %v2902_v28  ;;  %v2900_v30 = vld [vmem:[%s3911_s13 + $0x20] sm:$0xff] }
 0x194   : > { %1312 = vmatpush.msra.mxu0 %v1284_v60  ;;  %3020 = vmatpush.msra.mxu3 %v1284_v60  ;;  %v3089_v35 = vld [vmem:[%s3487_s25] ss:$0 sm:$0xff]  ;;  %v3090_v47 = vld [vmem:[%s3481_s2 + $0x1] ss:$0 sm:$0xff] }
 0x195   : > { %1372 = vmatpush.msrb.mxu2 %v1355_v9  ;;  %1500 = vmatpush.msra.mxu1 %v2901_v29  ;;  %v2914_v55 = vld [vmem:[%s3484_s1 + $0x20] sm:$0xff] }
 0x196   : > { %1313 = vmatpush.msra.mxu0 %v1283_v61  ;;  %3021 = vmatpush.msra.mxu3 %v1283_v61 }
 0x197   : > { %2888 = vmatmul.msk.f32.vlgmr.msra.gmra.mxu0 %vm1291_vm8, %v3532_v59  ;;  %2889 = vmatmul.msk.f32.vlgmr.msra.gmra.mxu3 %vm1291_vm8, %v3538_v62 }
 0x198   : > { %1373 = vmatpush.msrb.mxu2 %v1354_v10  ;;  %1501 = vmatpush.msra.mxu1 %v2900_v30 }
 0x199   : > { %2905 = vmatmul.msk.f32.vlgmr.msra.gmra.mxu1 %vm1291_vm8, %v3532_v59 }
 0x19a   : > { %1374 = vmatpush.msrb.mxu2 %v1353_v11 }
 0x19b   : > { %2891 = vmatmul.msk.f32.gmra.mxu2 %vm1291_vm8, %v3538_v62 }
 0x19c   : > { %1375 = vmatpush.msrb.mxu2 %v1352_v12 }
 0x19e   : > { %1531 = vmatpush.msra.mxu2 %v2910_v13 }
 0x1a0   : > { %1532 = vmatpush.msra.mxu2 %v2909_v14 }
 0x1a1   : > { %2906 = vmatmul.msk.f32.gmra.mxu1 %vm1291_vm8, %v3538_v62 }
 0x1a2   : > { %1533 = vmatpush.msra.mxu2 %v2908_v15 }
 0x1a3   : > { %2892 = vmatmul.msk.f32.vlgmr.msrb.gmra.mxu2 %vm1291_vm8, %v3532_v59 }
 0x1a4   : > { %1534 = vmatpush.msra.mxu2 %v2907_v16 }
 0x1ab   : > { %2893 = vmatmul.msk.f32.gmra.mxu2 %vm1291_vm8, %v3538_v62 }
 0x1b3   : > { %2912 = vmatmul.msk.f32.vlgmr.msra.gmra.mxu2 %vm1291_vm8, %v3532_v59 }
 0x1bb   : > { %2913 = vmatmul.msk.f32.gmra.mxu2 %vm1291_vm8, %v3538_v62 }
 0x214   : > { %v1315_v4 = vpop.f32.mrf.mxu0 }
 0x215   : > { %v1316_v6 = vadd.f32 %v3088_v3, %v1315_v4  ;;  %v1475_v4 = vld [vmem:[%s3493_s21] sm:$0xff] }
 0x216   : > { %v1346_v63 = vpop.f32.mrf.mxu2 }
 0x217   : > { %v1347_v5 = vadd.f32 %v3087_v0, %v1346_v63  ;;  %v1503_v63 = vpop.f32.mrf.mxu1 }
 0x21a   : > { %v1318_v7 = vpop.f32.mrf.mxu3 }
 0x21b   : > { %v1319_v8 = vadd.f32 %v3088_v3, %v1318_v7 }
 0x21e   : > { %v1349_v1 = vpop.f32.mrf.mxu2 }
 0x21f   : > { %v1350_v2 = vadd.f32 %v3087_v0, %v1349_v1  ;;  %v3091_v0 = vld [vmem:[%s3912_s7 + $0x1] ss:$0 sm:$0xff] }
 0x220   : > { %v1504_v1 = vadd.f32 %v3091_v0, %v1503_v63  ;;  %v2948_v63 = vld [vmem:[%s3484_s1 + $0x50] sm:$0xff] }
 0x221   : > { %2894 = vmatpush.xpose.msk.msrb.mxu3 %vm1383_vm9, %v1350_v2  ;;  %v1506_v2 = vpop.f32.mrf.mxu1 }
 0x222   : > { %v1507_v3 = vadd.f32 %v3091_v0, %v1506_v2  ;;  %v2947_v0 = vld [vmem:[%s3484_s1 + $0x48] sm:$0xff] }
 0x225   : > { %2895 = vmatpush.xpose.msk.msrb.mxu3 %vm1383_vm9, %v1347_v5 }
 0x226   : > { %v1377_v32 = vpop.f32.mrf.mxu2 }
 0x227   : > { %v1378_v39 = vadd.f32 %v3089_v35, %v1377_v32  ;;  %v2942_v32 = vld [vmem:[%s3478_s28 + $0x58] sm:$0xff] }
 0x228   : > { %2896 = vmatmul.msk.f32.vlgmr.msrb.gmra.mxu3 %vm1383_vm9, %v1316_v6 }
 0x229   : > { %1564 = vmatpush.msra.mxu3 %v2917_v52 }
 0x22b   : > { %1565 = vmatpush.msra.mxu3 %v2916_v53 }
 0x22d   : > { %1566 = vmatpush.msra.mxu3 %v2915_v54  ;;  %v3094_v54 = vld [vmem:[%s3912_s7 + $0x2] ss:$0 sm:$0xff] }
 0x22e   : > { %v1380_v37 = vpop.f32.mrf.mxu2 }
 0x22f   : > { %v1381_v40 = vadd.f32 %v3089_v35, %v1380_v37  ;;  %1567 = vmatpush.msra.mxu3 %v2914_v55  ;;  %v2939_v35 = vld [vmem:[%s3478_s28 + $0x40] sm:$0xff] }
 0x230   : > { %2897 = vmatmul.msk.f32.gmra.mxu3 %vm1383_vm9, %v1319_v8  ;;  %v3092_v8 = vld [vmem:[%s3487_s25 + $0x1] ss:$0 sm:$0xff] }
 0x231   : > { %1466 = vmatpush.msrb.mxu0 %v1381_v40  ;;  %1717 = vmatpush.msrb.mxu3 %v1475_v4  ;;  %v2932_v40 = vld [vmem:[%s3911_s13 + $0x40] sm:$0xff] }
 0x233   : > { %1467 = vmatpush.msrb.mxu0 %v1378_v39  ;;  %v2933_v39 = vld [vmem:[%s3911_s13 + $0x48] sm:$0xff] }
 0x236   : > { %v1536_v46 = vpop.f32.mrf.mxu2 }
 0x237   : > { %v1537_v50 = vadd.f32 %v3090_v47, %v1536_v46  ;;  %v2927_v46 = vld [vmem:[%s3493_s21 + $0x8] sm:$0xff] }
 0x238   : > { %2919 = vmatmul.msk.f32.vlgmr.msra.gmra.mxu3 %vm1291_vm8, %v3532_v59  ;;  %1688 = vmatpush.msrb.mxu2 %v2927_v46 }
 0x23e   : > { %v1539_v48 = vpop.f32.mrf.mxu2 }
 0x23f   : > { %v1540_v49 = vadd.f32 %v3090_v47, %v1539_v48 }
 0x240   : > { %2920 = vmatmul.msk.f32.gmra.mxu3 %vm1291_vm8, %v3538_v62 }
 0x241   : > { %2921 = vmatpush.xpose.msk.msra.mxu0 %vm1383_vm9, %v1540_v49 }
 0x245   : > { %2922 = vmatpush.xpose.msk.msra.mxu0 %vm1383_vm9, %v1537_v50  ;;  %v3093_v50 = vld [vmem:[%s3481_s2 + $0x2] ss:$0 sm:$0xff] }
 0x2ab   : > { %v1413_v17 = vpop.f32.mrf.mxu3 }
 0x2ac   : > { %v1419_v19 = vmul.f32 0.35355338, %v1413_v17 }
 0x2ae   : > { %v1421_v20 = vadd.f32 %v1419_v19, %v3565_v18 }
 0x2b0   : > { %v1424_v21 = vsel %vm1423_vm10, %v1421_v20, -inf }
 0x2b1   : > { %1425 = vmax.xlane.f32.xlu0 %v1424_v21 }
 0x2b3   : > { %v1416_v22 = vpop.f32.mrf.mxu3 }
 0x2b4   : > { %v1420_v24 = vmul.f32 0.35355338, %v1416_v22 }
 0x2b6   : > { %v1422_v25 = vadd.f32 %v1420_v24, %v3572_v23 }
 0x2b8   : > { %v1427_v26 = vsel %vm1423_vm10, %v1422_v25, -inf }
 0x2b9   : > { %1428 = vmax.xlane.f32.xlu0 %v1427_v26 }
 0x2bb   : > { %v1569_v6 = vpop.f32.mrf.mxu3 }
 0x2bc   : > { %v1570_v10 = vadd.f32 %v3092_v8, %v1569_v6 }
 0x2c3   : > { %v1572_v9 = vpop.f32.mrf.mxu3 }
 0x2c4   : > { %v1573_v11 = vadd.f32 %v3092_v8, %v1572_v9 }
 0x2c6   : > { %1656 = vmatpush.msrb.mxu1 %v1573_v11 }
 0x2c8   : > { %1657 = vmatpush.msrb.mxu1 %v1570_v10 }
 0x2ca   : > { %1780 = vmatpush.msra.mxu1 %v2942_v32 }
 0x324   : > { %v1426_v31 = vpop.xlane.xlu0 %1425 }
 0x325   : > { %v1430_v33 = vsub.f32 %v1421_v20, %v1426_v31 }
 0x327   : > { %v1432_v34 = vmul.f32 1.442695, %v1430_v33  ;;  %v2941_v33 = vld [vmem:[%s3478_s28 + $0x50] sm:$0xff] }
 0x328   : > { %1781 = vmatpush.msra.mxu1 %v2941_v33 }
 0x329   : > { %3106 = vpow2.f32 %v1432_v34  ;;  %v2940_v34 = vld [vmem:[%s3478_s28 + $0x48] sm:$0xff] }
 0x32a   : > { %1782 = vmatpush.msra.mxu1 %v2940_v34  ;;  %v2965_v34 = vld [vmem:[%s3911_s13 + $0x78] sm:$0xff] }
 0x32c   : > { %v1429_v36 = vpop.xlane.xlu0 %1428  ;;  %1783 = vmatpush.msra.mxu1 %v2939_v35  ;;  %v2964_v35 = vld [vmem:[%s3911_s13 + $0x70] sm:$0xff] }
 0x32d   : > { %v1431_v38 = vsub.f32 %v1422_v25, %v1429_v36  ;;  %v2935_v36 = vld [vmem:[%s3911_s13 + $0x58] sm:$0xff] }
 0x32f   : > { %v3107_v41 = vpop.eup %3106  ;;  %v1434_v42 = vmul.f32 1.442695, %v1431_v38  ;;  %v2934_v38 = vld [vmem:[%s3911_s13 + $0x50] sm:$0xff] }
 0x330   : > { %v1436_v43 = vsel %vm1423_vm10, %v3107_v41, 0.0 }
 0x331   : > { %3108 = vpow2.f32 %v1434_v42  ;;  %1437 = vadd.xlane.f32.xlu1 %v1436_v43 }
 0x337   : > { %v3109_v44 = vpop.eup %3108 }
 0x338   : > { %v1439_v45 = vsel %vm1423_vm10, %v3109_v44, 0.0 }
 0x339   : > { %1440 = vadd.xlane.f32.xlu1 %v1439_v45 }
 0x3a4   : > { %v1438_v51 = vpop.xlane.xlu1 %1437 }
 0x3a5   : > { %3110 = vrcp.f32 %v1438_v51 }
 0x3ab   : > { %v3111_v56 = vpop.eup %3110 }
 0x3ac   : > { %v1441_v57 = vpop.xlane.xlu1 %1440  ;;  %v1444_v58 = vmul.f32 %v3111_v56, %v3107_v41 }
 0x3ad   : > { %3112 = vrcp.f32 %v1441_v57 }
 0x3ae   : > { %2898 = vmatmul.msk.f32.vlgmr.msrb.gmra.mxu0 %vm1423_vm10, %v1444_v58 }
 0x3af   : > { %1747 = vmatpush.msrb.mxu0 %v2935_v36  ;;  %v2963_v36 = vld [vmem:[%s3911_s13 + $0x68] sm:$0xff] }
 0x3b1   : > { %1748 = vmatpush.msrb.mxu0 %v2934_v38  ;;  %v2959_v38 = vld [vmem:[%s3493_s21 + $0x10] sm:$0xff] }
 0x3b3   : > { %v3113_v60 = vpop.eup %3112  ;;  %1749 = vmatpush.msrb.mxu0 %v2933_v39 }
 0x3b4   : > { %v1445_v61 = vmul.f32 %v3113_v60, %v3109_v44 }
 0x3b5   : > { %1750 = vmatpush.msrb.mxu0 %v2932_v40 }
 0x3b6   : > { %2899 = vmatmul.msk.f32.gmra.mxu0 %vm1423_vm10, %v1445_v61  ;;  %v2949_v61 = vld [vmem:[%s3484_s1 + $0x58] sm:$0xff] }
 0x3b7   : > { %1813 = vmatpush.msra.mxu2 %v2949_v61 }
 0x3b9   : > { %1814 = vmatpush.msra.mxu2 %v2948_v63 }
 0x3bb   : > { %1815 = vmatpush.msra.mxu2 %v2947_v0  ;;  %v2977_v0 = vld [vmem:[%s3484_s1 + $0x68] sm:$0xff] }
 0x3be   : > { %2923 = vmatmul.msk.f32.vlgmr.msra.gmra.mxu0 %vm1383_vm9, %v1504_v1  ;;  %v2946_v1 = vld [vmem:[%s3484_s1 + $0x40] sm:$0xff] }
 0x3bf   : > { %1816 = vmatpush.msra.mxu2 %v2946_v1 }
 0x3c6   : > { %2924 = vmatmul.msk.f32.gmra.mxu0 %vm1383_vm9, %v1507_v3 }
 0x3ce   : > { %2937 = vmatmul.msk.f32.vlgmr.msrb.gmra.mxu0 %vm1291_vm8, %v3532_v59 }
 0x3d6   : > { %2938 = vmatmul.msk.f32.gmra.mxu0 %vm1291_vm8, %v3538_v62 }
 0x42b   : > { %v1469_v5 = vpop.f32.mrf.mxu0 }
 0x42c   : > { %2930 = vmatmul.msk.f32.vlgmr.msrb.gmra.mxu3 %vm1383_vm9, %v1469_v5 }
 0x433   : > { %v1472_v7 = vpop.f32.mrf.mxu0 }
 0x434   : > { %2931 = vmatmul.msk.f32.gmra.mxu3 %vm1383_vm9, %v1472_v7 }
 0x43b   : > { %v1604_v12 = vpop.f32.mrf.mxu0 }
 0x43c   : > { %v1610_v13 = vmul.f32 0.35355338, %v1604_v12  ;;  %v2972_v12 = vld [vmem:[%s3478_s28 + $0x78] sm:$0xff] }
 0x43e   : > { %v1612_v14 = vadd.f32 %v1610_v13, %v3565_v18  ;;  %v2971_v13 = vld [vmem:[%s3478_s28 + $0x70] sm:$0xff] }
 0x440   : > { %v1614_v15 = vsel %vm1423_vm10, %v1612_v14, -inf }
 0x441   : > { %1615 = vmax.xlane.f32.xlu2 %v1614_v15 }
 0x443   : > { %v1607_v16 = vpop.f32.mrf.mxu0 }
 0x444   : > { %v1611_v17 = vmul.f32 0.35355338, %v1607_v16  ;;  %v2969_v16 = vld [vmem:[%s3478_s28 + $0x60] sm:$0xff] }
 0x446   : > { %v1613_v19 = vadd.f32 %v1611_v17, %v3572_v23 }
 0x448   : > { %v1617_v20 = vsel %vm1423_vm10, %v1613_v19, -inf }
 0x449   : > { %1618 = vmax.xlane.f32.xlu2 %v1617_v20 }
 0x44b   : > { %v1752_v53 = vpop.f32.mrf.mxu0 }
 0x44c   : > { %v1753_v56 = vadd.f32 %v3094_v54, %v1752_v53  ;;  %v3097_v53 = vld [vmem:[%s3912_s7 + $0x3] ss:$0 sm:$0xff] }
 0x453   : > { %v1755_v57 = vpop.f32.mrf.mxu0 }
 0x454   : > { %v1756_v58 = vadd.f32 %v3094_v54, %v1755_v57  ;;  %v2979_v57 = vld [vmem:[%s3484_s1 + $0x78] sm:$0xff] }
 0x4af   : > { %v3642_v60 = vpop.f32.mrf.mxu3 }
 0x4b4   : > { %v1616_v21 = vpop.xlane.xlu2 %1615 }
 0x4b5   : > { %v1620_v22 = vsub.f32 %v1612_v14, %v1616_v21  ;;  %v2970_v14 = vld [vmem:[%s3478_s28 + $0x68] sm:$0xff] }
 0x4b7   : > { %v1622_v24 = vmul.f32 1.442695, %v1620_v22  ;;  %v3650_v2 = vpop.f32.mrf.mxu3  ;;  %v3095_v22 = vld [vmem:[%s3487_s25 + $0x2] ss:$0 sm:$0xff] }
 0x4b9   : > { %3114 = vpow2.f32 %v1622_v24 }
 0x4bc   : > { %v1619_v25 = vpop.xlane.xlu2 %1618 }
 0x4bd   : > { %v1621_v26 = vsub.f32 %v1613_v19, %v1619_v25 }
 0x4bf   : > { %v3115_v27 = vpop.eup %3114  ;;  %v1624_v28 = vmul.f32 1.442695, %v1621_v26 }
 0x4c0   : > { %v1626_v29 = vsel %vm1423_vm10, %v3115_v27, 0.0 }
 0x4c1   : > { %3116 = vpow2.f32 %v1624_v28  ;;  %1627 = vadd.xlane.f32.xlu0 %v1626_v29 }
 0x4c7   : > { %v3117_v30 = vpop.eup %3116 }
 0x4c8   : > { %v1629_v31 = vsel %vm1423_vm10, %v3117_v30, 0.0 }
 0x4c9   : > { %1630 = vadd.xlane.f32.xlu1 %v1629_v31 }
 0x534   : > { %v1628_v37 = vpop.xlane.xlu0 %1627 }
 0x535   : > { %3118 = vrcp.f32 %v1628_v37  ;;  %v2962_v37 = vld [vmem:[%s3911_s13 + $0x60] sm:$0xff] }
 0x53b   : > { %v3119_v41 = vpop.eup %3118 }
 0x53c   : > { %v1631_v42 = vpop.xlane.xlu1 %1630  ;;  %v1634_v43 = vmul.f32 %v3119_v41, %v3115_v27  ;;  %v3096_v41 = vld [vmem:[%s3481_s2 + $0x3] ss:$0 sm:$0xff] }
 0x53d   : > { %3120 = vrcp.f32 %v1631_v42 }
 0x53e   : > { %2925 = vmatmul.msk.f32.vlgmr.msrb.gmra.mxu1 %vm1423_vm10, %v1634_v43 }
 0x53f   : > { %1937 = vmatpush.msrb.mxu1 %v2959_v38 }
 0x543   : > { %v3121_v44 = vpop.eup %3120 }
 0x544   : > { %v1635_v45 = vmul.f32 %v3121_v44, %v3117_v30 }
 0x546   : > { %2926 = vmatmul.msk.f32.gmra.mxu1 %vm1423_vm10, %v1635_v45 }
 0x54e   : > { %2944 = vmatmul.msk.f32.vlgmr.msra.gmra.mxu1 %vm1291_vm8, %v3532_v59 }
 0x556   : > { %2945 = vmatmul.msk.f32.gmra.mxu1 %vm1291_vm8, %v3538_v62 }
 0x5bb   : > { %v1659_v47 = vpop.f32.mrf.mxu1 }
 0x5bc   : > { %2928 = vmatmul.msk.f32.vlgmr.msrb.gmra.mxu2 %vm1383_vm9, %v1659_v47 }
 0x5bd   : > { %1969 = vmatpush.msrb.mxu2 %v2965_v34 }
 0x5bf   : > { %1970 = vmatpush.msrb.mxu2 %v2964_v35 }
 0x5c1   : > { %1971 = vmatpush.msrb.mxu2 %v2963_v36 }
 0x5c3   : > { %v1662_v48 = vpop.f32.mrf.mxu1  ;;  %1972 = vmatpush.msrb.mxu2 %v2962_v37  ;;  %v3099_v37 = vld [vmem:[%s1174_s10] ss:$0 sm:$0xff] }
 0x5c4   : > { %2929 = vmatmul.msk.f32.gmra.mxu2 %vm1383_vm9, %v1662_v48 }
 0x5cb   : > { %v1785_v49 = vpop.f32.mrf.mxu1 }
 0x5cc   : > { %v1786_v55 = vadd.f32 %v3093_v50, %v1785_v49  ;;  %2951 = vmatmul.msk.f32.vlgmr.msra.gmra.mxu2 %vm1291_vm8, %v3532_v59 }
 0x5d3   : > { %v1788_v51 = vpop.f32.mrf.mxu1 }
 0x5d4   : > { %v1789_v52 = vadd.f32 %v3093_v50, %v1788_v51  ;;  %2952 = vmatmul.msk.f32.gmra.mxu2 %vm1291_vm8, %v3538_v62 }
 0x5d6   : > { %2953 = vmatpush.xpose.msk.msra.mxu3 %vm1383_vm9, %v1789_v52 }
 0x5da   : > { %2954 = vmatpush.xpose.msk.msra.mxu3 %vm1383_vm9, %v1786_v55 }
 0x5dc   : > { %2967 = vmatmul.msk.f32.vlgmr.msrb.gmra.mxu2 %vm1291_vm8, %v3532_v59 }
 0x5dd   : > { %2955 = vmatmul.msk.f32.vlgmr.msra.gmra.mxu3 %vm1383_vm9, %v1753_v56 }
 0x5de   : > { %2002 = vmatpush.msrb.mxu3 %v2972_v12 }
 0x5e0   : > { %2003 = vmatpush.msrb.mxu3 %v2971_v13 }
 0x5e2   : > { %2004 = vmatpush.msrb.mxu3 %v2970_v14  ;;  %v3098_v14 = vld [vmem:[%s3487_s25 + $0x3] ss:$0 sm:$0xff] }
 0x5e4   : > { %2005 = vmatpush.msrb.mxu3 %v2969_v16  ;;  %2968 = vmatmul.msk.f32.gmra.mxu2 %vm1291_vm8, %v3538_v62 }
 0x5e5   : > { %2956 = vmatmul.msk.f32.gmra.mxu3 %vm1383_vm9, %v1756_v58  ;;  %v2978_v58 = vld [vmem:[%s3484_s1 + $0x70] sm:$0xff] }
 0x5ed   : > { %2974 = vmatmul.msk.f32.vlgmr.msrb.gmra.mxu3 %vm1291_vm8, %v3532_v59 }
 0x5f5   : > { %2975 = vmatmul.msk.f32.gmra.mxu3 %vm1291_vm8, %v3538_v62 }
 0x63f   : > { %v3658_v11 = vpop.f32.mrf.mxu2 }
 0x640   : > { %v1720_v61 = vadd.f32 %v3642_v60, %v3658_v11 }
 0x647   : > { %v3663_v15 = vpop.f32.mrf.mxu2 }
 0x64f   : > { %v1818_v19 = vpop.f32.mrf.mxu2 }
 0x650   : > { %v1819_v27 = vadd.f32 %v3095_v22, %v1818_v19 }
 0x657   : > { %v1821_v25 = vpop.f32.mrf.mxu2 }
 0x658   : > { %v1822_v28 = vadd.f32 %v3095_v22, %v1821_v25 }
 0x65a   : > { %1905 = vmatpush.msra.mxu0 %v1822_v28  ;;  %v2989_v28 = vld [vmem:[%s3493_s21 + $0x18] sm:$0xff] }
 0x65b   : > { %2159 = vmatpush.msra.mxu3 %v2989_v28 }
 0x65c   : > { %1906 = vmatpush.msra.mxu0 %v1819_v27 }
 0x65e   : > { %2035 = vmatpush.msrb.mxu0 %v2979_v57 }
 0x65f   : > { %v1974_v52 = vpop.f32.mrf.mxu2 }
 0x660   : > { %v1853_v3 = vpop.f32.mrf.mxu3  ;;  %v1975_v54 = vadd.f32 %v3097_v53, %v1974_v52  ;;  %2036 = vmatpush.msrb.mxu0 %v2978_v58 }
 0x661   : > { %v1859_v4 = vmul.f32 0.35355338, %v1853_v3  ;;  %v2976_v3 = vld [vmem:[%s3484_s1 + $0x60] sm:$0xff] }
 0x662   : > { %2037 = vmatpush.msrb.mxu0 %v2977_v0 }
 0x663   : > { %v1861_v5 = vadd.f32 %v1859_v4, %v3565_v18  ;;  %v1723_v4 = vadd.f32 %v3650_v2, %v3663_v15 }
 0x664   : > { %2038 = vmatpush.msrb.mxu0 %v2976_v3  ;;  %v2243_v3 = vld [vmem:[%s3500_s29 + $0x18] sm:$0xff] }
 0x665   : > { %v1863_v6 = vsel %vm1423_vm10, %v1861_v5, -inf }
 0x666   : > { %1864 = vmax.xlane.f32.xlu2 %v1863_v6 }
 0x667   : > { %v1977_v55 = vpop.f32.mrf.mxu2 }
 0x668   : > { %v1856_v7 = vpop.f32.mrf.mxu3  ;;  %v1978_v56 = vadd.f32 %v3097_v53, %v1977_v55 }
 0x669   : > { %v1860_v8 = vmul.f32 0.35355338, %v1856_v7 }
 0x66b   : > { %v1862_v9 = vadd.f32 %v1860_v8, %v3572_v23 }
 0x66d   : > { %v1866_v10 = vsel %vm1423_vm10, %v1862_v9, -inf }
 0x66e   : > { %1867 = vmax.xlane.f32.xlu0 %v1866_v10 }
 0x670   : > { %v2007_v40 = vpop.f32.mrf.mxu3 }
 0x671   : > { %v2008_v47 = vadd.f32 %v3096_v41, %v2007_v40 }
 0x678   : > { %v2010_v45 = vpop.f32.mrf.mxu3 }
 0x679   : > { %v2011_v46 = vadd.f32 %v3096_v41, %v2010_v45 }
 0x67b   : > { %2983 = vmatpush.xpose.msk.msra.mxu1 %vm1383_vm9, %v2011_v46 }
 0x67f   : > { %2984 = vmatpush.xpose.msk.msra.mxu1 %vm1383_vm9, %v2008_v47 }
 0x6d9   : > { %v1865_v17 = vpop.xlane.xlu2 %1864 }
 0x6da   : > { %v1869_v20 = vsub.f32 %v1861_v5, %v1865_v17 }
 0x6dc   : > { %v1871_v21 = vmul.f32 1.442695, %v1869_v20 }
 0x6de   : > { %3122 = vpow2.f32 %v1871_v21 }
 0x6e1   : > { %v1868_v24 = vpop.xlane.xlu0 %1867 }
 0x6e2   : > { %v1870_v26 = vsub.f32 %v1862_v9, %v1868_v24 }
 0x6e4   : > { %v3123_v29 = vpop.eup %3122  ;;  %v1873_v30 = vmul.f32 1.442695, %v1870_v26 }
 0x6e5   : > { %v1875_v31 = vsel %vm1423_vm10, %v3123_v29, 0.0 }
 0x6e6   : > { %3124 = vpow2.f32 %v1873_v30  ;;  %1876 = vadd.xlane.f32.xlu1 %v1875_v31 }
 0x6ec   : > { %v3125_v32 = vpop.eup %3124 }
 0x6ed   : > { %v1878_v33 = vsel %vm1423_vm10, %v3125_v32, 0.0 }
 0x6ee   : > { %1879 = vadd.xlane.f32.xlu2 %v1878_v33 }
 0x759   : > { %v1877_v39 = vpop.xlane.xlu1 %1876 }
 0x75a   : > { %3126 = vrcp.f32 %v1877_v39 }
 0x760   : > { %v3127_v42 = vpop.eup %3126 }
 0x761   : > { %v1883_v43 = vmul.f32 %v3127_v42, %v3123_v29  ;;  %v1880_v44 = vpop.xlane.xlu2 %1879 }
 0x762   : > { %3128 = vrcp.f32 %v1880_v44 }
 0x763   : > { %2957 = vmatmul.msk.f32.vlgmr.msra.gmra.mxu0 %vm1423_vm10, %v1883_v43 }
 0x764   : > { %2266 = vmatpush.msra.mxu0 %v2243_v3 }
 0x768   : > { %v3129_v48 = vpop.eup %3128 }
 0x769   : > { %v1884_v49 = vmul.f32 %v3129_v48, %v3125_v32  ;;  %v3279_v48 = vmov 32.0  }
 0x76b   : > { %2958 = vmatmul.msk.f32.gmra.mxu0 %vm1423_vm10, %v1884_v49 }
 0x773   : > { %2981 = vmatmul.msk.f32.vlgmr.msrb.gmra.mxu0 %vm1291_vm8, %v3532_v59 }
 0x77b   : > { %2982 = vmatmul.msk.f32.gmra.mxu0 %vm1291_vm8, %v3538_v62 }
 0x7e0   : > { %v1908_v50 = vpop.f32.mrf.mxu0 }
 0x7e1   : > { %2960 = vmatmul.msk.f32.vlgmr.msrb.gmra.mxu1 %vm1383_vm9, %v1908_v50 }
 0x7e8   : > { %v1911_v51 = vpop.f32.mrf.mxu0 }
 0x7e9   : > { %2961 = vmatmul.msk.f32.gmra.mxu1 %vm1383_vm9, %v1911_v51 }
 0x7f0   : > { %v2040_v2 = vpop.f32.mrf.mxu0 }
 0x7f1   : > { %2985 = vmatmul.msk.f32.vlgmr.msra.gmra.mxu1 %vm1383_vm9, %v1975_v54  ;;  %v2041_v20 = vadd.f32 %v3098_v14, %v2040_v2 }
 0x7f8   : > { %v2043_v17 = vpop.f32.mrf.mxu0 }
 0x7f9   : > { %2986 = vmatmul.msk.f32.gmra.mxu1 %vm1383_vm9, %v1978_v56  ;;  %v2044_v21 = vadd.f32 %v3098_v14, %v2043_v17 }
 0x7fb   : > { %2127 = vmatpush.msra.mxu2 %v2044_v21 }
 0x7fd   : > { %2128 = vmatpush.msra.mxu2 %v2041_v20 }
 0x85e   : > { %v1939_v63 = vpop.f32.mrf.mxu1 }
 0x85f   : > { %v1945_v1 = vadd.f32 %v1939_v63, %v1720_v61 }
 0x866   : > { %v1942_v5 = vpop.f32.mrf.mxu1 }
 0x867   : > { %v1946_v6 = vadd.f32 %v1942_v5, %v1723_v4  ;;  %v2242_v4 = vld [vmem:[%s3500_s29 + $0x10] sm:$0xff]  ;;  %v2241_v5 = vld [vmem:[%s3500_s29 + $0x8] sm:$0xff] }
 0x868   : > { %2267 = vmatpush.msra.mxu0 %v2242_v4 }
 0x86a   : > { %2268 = vmatpush.msra.mxu0 %v2241_v5 }
 0x86e   : > { %v2075_v60 = vpop.f32.mrf.mxu1 }
 0x86f   : > { %v2081_v7 = vmul.f32 0.35355338, %v2075_v60 }
 0x871   : > { %v2083_v8 = vadd.f32 %v2081_v7, %v3565_v18 }
 0x873   : > { %v2085_v9 = vsel %vm1423_vm10, %v2083_v8, -inf }
 0x874   : > { %2086 = vmax.xlane.f32.xlu0 %v2085_v9  ;;  %v2310_v9 = vld [vmem:[%s3505_s0 + $0x78] sm:$0xff] }
 0x875   : > { %2315 = vmatpush.msrb.mxu1 %v2310_v9 }
 0x876   : > { %v2078_v10 = vpop.f32.mrf.mxu1 }
 0x877   : > { %v2082_v11 = vmul.f32 0.35355338, %v2078_v10  ;;  %v2309_v10 = vld [vmem:[%s3505_s0 + $0x70] sm:$0xff] }
 0x878   : > { %2316 = vmatpush.msrb.mxu1 %v2309_v10  ;;  %v3103_v10 = vld [vmem:[%s1196_s3] ss:$0 sm:$0xff] }
 0x879   : > { %v2084_v12 = vadd.f32 %v2082_v11, %v3572_v23  ;;  %v2308_v11 = vld [vmem:[%s3505_s0 + $0x68] sm:$0xff] }
 0x87a   : > { %2317 = vmatpush.msrb.mxu1 %v2308_v11 }
 0x87b   : > { %v2088_v13 = vsel %vm1423_vm10, %v2084_v12, -inf }
 0x87c   : > { %2089 = vmax.xlane.f32.xlu1 %v2088_v13 }
 0x8e7   : > { %v2087_v15 = vpop.xlane.xlu0 %2086 }
 0x8e8   : > { %v2091_v16 = vsub.f32 %v2083_v8, %v2087_v15 }
 0x8ea   : > { %v2093_v19 = vmul.f32 1.442695, %v2091_v16 }
 0x8ec   : > { %3130 = vpow2.f32 %v2093_v19 }
 0x8ef   : > { %v2090_v18 = vpop.xlane.xlu1 %2089 }
 0x8f0   : > { %v2092_v22 = vsub.f32 %v2084_v12, %v2090_v18 }
 0x8f2   : > { %v3131_v24 = vpop.eup %3130  ;;  %v2095_v25 = vmul.f32 1.442695, %v2092_v22  ;;  %v3100_v22 = vld [vmem:[%s1177_s9] ss:$0 sm:$0xff] }
 0x8f3   : > { %v2097_v23 = vsel %vm1423_vm10, %v3131_v24, 0.0 }
 0x8f4   : > { %3132 = vpow2.f32 %v2095_v25  ;;  %2098 = vadd.xlane.f32.xlu2 %v2097_v23 }
 0x8fa   : > { %v3133_v26 = vpop.eup %3132 }
 0x8fb   : > { %v2100_v27 = vsel %vm1423_vm10, %v3133_v26, 0.0 }
 0x8fc   : > { %2101 = vadd.xlane.f32.xlu0 %v2100_v27 }
 0x967   : > { %v2099_v29 = vpop.xlane.xlu2 %2098 }
 0x968   : > { %3134 = vrcp.f32 %v2099_v29 }
 0x96e   : > { %v3135_v30 = vpop.eup %3134 }
 0x96f   : > { %v2105_v31 = vmul.f32 %v3135_v30, %v3131_v24  ;;  %v2102_v32 = vpop.xlane.xlu0 %2101 }
 0x970   : > { %3136 = vrcp.f32 %v2102_v32 }
 0x971   : > { %2987 = vmatmul.msk.f32.vlgmr.msra.gmra.mxu2 %vm1423_vm10, %v2105_v31  ;;  %3138 = vrcp.f32 %v3279_v48  ;;  %v2295_v48 = vld [vmem:[%s3505_s0] sm:$0xff] }
 0x976   : > { %v3137_v33 = vpop.eup %3136 }
 0x977   : > { %v2106_v34 = vmul.f32 %v3137_v33, %v3133_v26  ;;  %v3139_v49 = vpop.eup %3138  ;;  %v3101_v26 = vld [vmem:[%s1180_s23] ss:$0 sm:$0xff] }
 0x978   : > { %v2186_v50 = vmul.f32 32.0, %v3139_v49  ;;  %vm2190_vm11 = vweird.f32 %v3139_v49 }
 0x979   : > { %2988 = vmatmul.msk.f32.gmra.mxu2 %vm1423_vm10, %v2106_v34 }
 0x97a   : > { %v2187_v51 = vsub.f32 1.0, %v2186_v50 }
 0x97c   : > { %v2188_v52 = vmul.f32 %v3139_v49, %v2187_v51 }
 0x97e   : > { %v2189_v53 = vadd.f32 %v3139_v49, %v2188_v52 }
 0x9f4   : > { %v2130_v35 = vpop.f32.mrf.mxu2 }
 0x9f5   : > { %2990 = vmatmul.msk.f32.vlgmr.msra.gmra.mxu3 %vm1383_vm9, %v2130_v35 }
 0x9fc   : > { %v2133_v36 = vpop.f32.mrf.mxu2 }
 0x9fd   : > { %2991 = vmatmul.msk.f32.gmra.mxu3 %vm1383_vm9, %v2133_v36  ;;  %v2307_v36 = vld [vmem:[%s3505_s0 + $0x60] sm:$0xff] }
 0x9fe   : > { %2318 = vmatpush.msrb.mxu1 %v2307_v36 }
 0xa78   : > { %v2161_v38 = vpop.f32.mrf.mxu3 }
 0xa79   : > { %v2167_v39 = vadd.f32 %v2161_v38, %v1945_v1  ;;  %v2305_v38 = vld [vmem:[%s3505_s0 + $0x50] sm:$0xff] }
 0xa7b   : > { %v2173_v40 = vadd.f32 %v3099_v37, %v2167_v39  ;;  %v2304_v39 = vld [vmem:[%s3505_s0 + $0x48] sm:$0xff] }
 0xa7d   : > { %v2175_v41 = vadd.f32 %v2173_v40, %v3532_v59  ;;  %v3723_v59 = vsel %vm2190_vm11, %v3139_v49, %v2189_v53  ;;  %v2303_v40 = vld [vmem:[%s3505_s0 + $0x40] sm:$0xff] }
 0xa7e   : > { %v3102_v49 = vld [vmem:[%s1188_s18] ss:$0 sm:$0xff] }
 0xa7f   : > { %v2179_v42 = vsel %vm1291_vm8, %v2175_v41, 0.0 }
 0xa80   : > { %2180 = vadd.xlane.f32.xlu1 %v2179_v42  ;;  %v2164_v43 = vpop.f32.mrf.mxu3  ;;  %v2301_v42 = vld [vmem:[%s3505_s0 + $0x30] sm:$0xff] }
 0xa81   : > { %v2168_v44 = vadd.f32 %v2164_v43, %v1946_v6  ;;  %v2240_v6 = vld [vmem:[%s3500_s29] sm:$0xff]  ;;  %v2300_v43 = vld [vmem:[%s3505_s0 + $0x28] sm:$0xff] }
 0xa82   : > { %2269 = vmatpush.msra.mxu0 %v2240_v6 }
 0xa83   : > { %v2174_v45 = vadd.f32 %v3099_v37, %v2168_v44  ;;  %v2306_v37 = vld [vmem:[%s3505_s0 + $0x58] sm:$0xff]  ;;  %v2299_v44 = vld [vmem:[%s3505_s0 + $0x20] sm:$0xff] }
 0xa84   : > { %2319 = vmatpush.msrb.mxu1 %v2306_v37 }
 0xa85   : > { %v2176_v46 = vadd.f32 %v2174_v45, %v3538_v62  ;;  %v2298_v45 = vld [vmem:[%s3505_s0 + $0x18] sm:$0xff] }
 0xa86   : > { %2320 = vmatpush.msrb.mxu1 %v2305_v38 }
 0xa87   : > { %v2182_v47 = vsel %vm1291_vm8, %v2176_v46, 0.0 }
 0xa88   : > { %2183 = vadd.xlane.f32.xlu2 %v2182_v47  ;;  %2321 = vmatpush.msrb.mxu1 %v2304_v39  ;;  %v2296_v47 = vld [vmem:[%s3505_s0 + $0x8] sm:$0xff] }
 0xa8a   : > { %2322 = vmatpush.msrb.mxu1 %v2303_v40 }
 0xaf3   : > { %v2181_v54 = vpop.xlane.xlu1 %2180 }
 0xaf4   : > { %v2192_v55 = vmul.f32 %v3723_v59, %v2181_v54 }
 0xaf6   : > { %v2194_v62 = vsub.f32 %v2175_v41, %v2192_v55  ;;  %v2302_v41 = vld [vmem:[%s3505_s0 + $0x38] sm:$0xff] }
 0xaf7   : > { %2323 = vmatpush.msrb.mxu1 %v2302_v41 }
 0xaf8   : > { %v2196_v56 = vmul.f32 %v2194_v62, %v2194_v62 }
 0xaf9   : > { %2324 = vmatpush.msrb.mxu1 %v2301_v42  ;;  %v3104_v42 = vld [vmem:[%s1199_s8] ss:$0 sm:$0xff]  ;;  %s3917_s8 = sld [smem:[#allocation39_spill]] }
 0xafa   : > { %v2198_v57 = vsel %vm1291_vm8, %v2196_v56, 0.0 }
 0xafb   : > { %2199 = vadd.xlane.f32.xlu0 %v2198_v57  ;;  %v2184_v58 = vpop.xlane.xlu2 %2183  ;;  %2325 = vmatpush.msrb.mxu1 %v2300_v43 }
 0xafc   : > { %v2193_v61 = vmul.f32 %v3723_v59, %v2184_v58 }
 0xafd   : > { %2326 = vmatpush.msrb.mxu1 %v2299_v44 }
 0xafe   : > { %v2195_v63 = vsub.f32 %v2176_v46, %v2193_v61  ;;  %v2297_v46 = vld [vmem:[%s3505_s0 + $0x10] sm:$0xff] }
 0xaff   : > { %2327 = vmatpush.msrb.mxu1 %v2298_v45  ;;  %v3105_v45 = vld [vmem:[%s1202_s26] ss:$0 sm:$0xff]  ;;  %p2994_p10 = scmp.ne.s32.totalorder %s3917_s8, 1 }
 0xb00   : > { %v2197_v0 = vmul.f32 %v2195_v63, %v2195_v63  ;;  %s3918_s23 = sld [smem:[#allocation31_spill]] (!%p2994_p10) }
 0xb01   : > { %2328 = vmatpush.msrb.mxu1 %v2297_v46  ;;  %s2472_s21 = sld [smem:[#allocation6]] (!%p2994_p10) }
 0xb02   : > { %v2201_v1 = vsel %vm1291_vm8, %v2197_v0, 0.0  ;;  %s2997_s10 = sld [smem:[#allocation6 + $0x1]] (!%p2994_p10) }
 0xb03   : > { %2202 = vadd.xlane.f32.xlu1 %v2201_v1  ;;  %2329 = vmatpush.msrb.mxu1 %v2296_v47  ;;  %s2998_s0 = sld [smem:[#allocation6 + $0x2]] (!%p2994_p10) }
 0xb04   : > { %s2999_s5 = sld [smem:[#allocation6 + $0x3]] (!%p2994_p10) }
 0xb05   : > { %2330 = vmatpush.msrb.mxu1 %v2295_v48  ;;  %s3000_s18 = sld [smem:[#allocation6 + $0x4]] (!%p2994_p10) }
 0xb06   : > { %s3001_s22 = sld [smem:[#allocation6 + $0x5]] (!%p2994_p10) }
 0xb07   : > { %s3002_s26 = sld [smem:[#allocation6 + $0x6]] (!%p2994_p10)  ;;  %s2473_s28 = scalar_lea.vmem (!%p2994_p10), [#allocation2], %s2472_s21 }
 0xb08   : > { %s3003_s2 = sld [smem:[#allocation6 + $0x7]] (!%p2994_p10)  ;;  %s2477_s1 = scalar_lea.vmem (!%p2994_p10), [#allocation2], %s2997_s10 }
 0xb09   : > { %s2481_s25 = scalar_lea.vmem (!%p2994_p10), [#allocation2], %s2998_s0  ;;  %s3919_s16 = sld [smem:[#allocation32_spill]] (!%p2994_p10) }
 0xb0a   : > { %s2485_s14 = scalar_lea.vmem (!%p2994_p10), [#allocation2], %s2999_s5  ;;  %s3920_s29 = sld [smem:[#allocation27_spill]] (!%p2994_p10) }
 0xb0b   : > { %s2489_s13 = scalar_lea.vmem (!%p2994_p10), [#allocation2], %s3000_s18  ;;  %s3921_s8 = sld [smem:[#allocation35_spill]] (!%p2994_p10) }
 0xb0c   : > { %s2493_s7 = scalar_lea.vmem (!%p2994_p10), [#allocation2], %s3001_s22  ;;  %s3922_s21 = sld [smem:[#allocation29_spill]] (!%p2994_p10) }
 0xb0d   : > { %s2497_s3 = scalar_lea.vmem (!%p2994_p10), [#allocation2], %s3002_s26  ;;  %s3923_s10 = sld [smem:[#allocation28_spill]] (!%p2994_p10) }
 0xb0e   : > { %s2501_s9 = scalar_lea.vmem (!%p2994_p10), [#allocation2], %s3003_s2  ;;  %s3924_s0 = sld [smem:[#allocation33_spill]] (!%p2994_p10) }
 0xb0f   : > { %s3925_s5 = sld [smem:[#allocation34_spill]] (!%p2994_p10) }
 0xb10   : > { %s3926_s18 = sld [smem:[#allocation30_spill]] (!%p2994_p10) }
 0xb6e   : > { %v2200_v60 = vpop.xlane.xlu0 %2199 }
 0xb6f   : > { %v2204_v7 = vmul.f32 %v2200_v60, %v3723_v59 }
 0xb71   : > { %v2206_v8 = vadd.f32 1e-05, %v2204_v7 }
 0xb73   : > { %3140 = vrsqrt.f32 %v2206_v8  ;;  %vm2214_vm13 = vweird.f32 %v2206_v8 }
 0xb76   : > { %v2203_v12 = vpop.xlane.xlu1 %2202 }
 0xb77   : > { %v2205_v13 = vmul.f32 %v2203_v12, %v3723_v59 }
 0xb79   : > { %v3141_v2 = vpop.eup %3140  ;;  %v2207_v14 = vadd.f32 1e-05, %v2205_v13 }
 0xb7a   : > { %v2209_v15 = vmul.f32 %v3141_v2, %v2206_v8  ;;  %vm2215_vm12 = vweird.f32 %v3141_v2 }
 0xb7b   : > { %3142 = vrsqrt.f32 %v2207_v14  ;;  %vm2216_vm14 = vmor %vm2214_vm13, %vm2215_vm12  ;;  %vm2224_vm0 = vweird.f32 %v2207_v14 }
 0xb7c   : > { %v2210_v16 = vmul.f32 %v3141_v2, %v2209_v15 }
 0xb7e   : > { %v2211_v17 = vmul.f32 0.5, %v2210_v16 }
 0xb80   : > { %v2212_v19 = vsub.f32 1.5, %v2211_v17 }
 0xb81   : > { %v3143_v20 = vpop.eup %3142 }
 0xb82   : > { %v2213_v21 = vmul.f32 %v3141_v2, %v2212_v19  ;;  %v2219_v18 = vmul.f32 %v3143_v20, %v2207_v14  ;;  %vm2225_vm15 = vweird.f32 %v3143_v20 }
 0xb83   : > { %vm2226_vm1 = vmor %vm2224_vm0, %vm2225_vm15 }
 0xb84   : > { %v2217_v24 = vsel %vm2216_vm14, %v3141_v2, %v2213_v21  ;;  %v2220_v25 = vmul.f32 %v3143_v20, %v2219_v18 }
 0xb85   : > { %v2228_v23 = vmul.f32 %v2217_v24, %v2194_v62 }
 0xb86   : > { %v2221_v27 = vmul.f32 0.5, %v2220_v25 }
 0xb87   : > { %v2233_v28 = vmul.f32 %v3100_v22, %v2228_v23 }
 0xb88   : > { %v2222_v29 = vsub.f32 1.5, %v2221_v27 }
 0xb89   : > { %v3744_v30 = vadd.f32 %v3101_v26, %v2233_v28 }
 0xb8a   : > { %v2223_v31 = vmul.f32 %v3143_v20, %v2222_v29 }
 0xb8b   : > { %2992 = vmatmul.msk.f32.vlgmr.msra.gmra.mxu0 %vm1291_vm8, %v3744_v30 }
 0xb8c   : > { %v2227_v32 = vsel %vm2226_vm1, %v3143_v20, %v2223_v31 }
 0xb8d   : > { %v2229_v33 = vmul.f32 %v2227_v32, %v2195_v63 }
 0xb8f   : > { %v2234_v34 = vmul.f32 %v3100_v22, %v2229_v33 }
 0xb91   : > { %v3748_v35 = vadd.f32 %v3101_v26, %v2234_v34 }
 0xb93   : > { %2993 = vmatmul.msk.f32.gmra.mxu0 %vm1291_vm8, %v3748_v35 }
 0xc08   : > { %v2271_v50 = vpop.f32.mrf.mxu0 }
 0xc09   : > { %v2272_v51 = vadd.f32 %v3102_v49, %v2271_v50 }
 0xc0b   : > { %v2277_v52 = vmul.f32 %v2272_v51, %v2272_v51 }
 0xc0d   : > { %v2279_v53 = vmul.f32 %v2277_v52, %v2272_v51 }
 0xc0f   : > { %v2281_v54 = vmul.f32 0.044715, %v2279_v53 }
 0xc10   : > { %v2274_v55 = vpop.f32.mrf.mxu0 }
 0xc11   : > { %v2283_v62 = vadd.f32 %v2281_v54, %v2272_v51  ;;  %v2275_v56 = vadd.f32 %v3102_v49, %v2274_v55 }
 0xc13   : > { %v2285_v57 = vmul.f32 0.7978846, %v2283_v62  ;;  %v2278_v58 = vmul.f32 %v2275_v56, %v2275_v56 }
 0xc15   : > { %3144 = vtanh.f32 %v2285_v57  ;;  %v2280_v61 = vmul.f32 %v2278_v58, %v2275_v56 }
 0xc17   : > { %v2282_v63 = vmul.f32 0.044715, %v2280_v61 }
 0xc19   : > { %v2284_v0 = vadd.f32 %v2282_v63, %v2275_v56 }
 0xc1b   : > { %v3145_v1 = vpop.eup %3144  ;;  %v2286_v3 = vmul.f32 0.7978846, %v2284_v0 }
 0xc1c   : > { %v2289_v4 = vadd.f32 1.0, %v3145_v1 }
 0xc1d   : > { %3146 = vtanh.f32 %v2286_v3 }
 0xc1e   : > { %v2291_v5 = vmul.f32 0.5, %v2289_v4 }
 0xc20   : > { %v2293_v6 = vmul.f32 %v2291_v5, %v2272_v51 }
 0xc22   : > { %2331 = vmatmul.f32.vlgmr.msrb.gmra.mxu1 %v2293_v6 }
 0xc23   : > { %v3147_v60 = vpop.eup %3146 }
 0xc24   : > { %v2290_v7 = vadd.f32 1.0, %v3147_v60 }
 0xc26   : > { %v2292_v8 = vmul.f32 0.5, %v2290_v7 }
 0xc28   : > { %v2294_v9 = vmul.f32 %v2292_v8, %v2275_v56 }
 0xc2a   : > { %2334 = vmatmul.f32.gmra.mxu1 %v2294_v9 }
 0xc9f   : > { %v2332_v11 = vpop.f32.mrf.mxu1 }
 0xca0   : > { %v2333_v12 = vadd.f32 %v3103_v10, %v2332_v11 }
 0xca2   : > { %v2338_v13 = vadd.f32 %v2333_v12, %v3744_v30 }
 0xca4   : > { %v2342_v2 = vsel %vm1291_vm8, %v2338_v13, 0.0 }
 0xca5   : > { %2343 = vadd.xlane.f32.xlu2 %v2342_v2 }
 0xca7   : > { %v2335_v14 = vpop.f32.mrf.mxu1 }
 0xca8   : > { %v2336_v15 = vadd.f32 %v3103_v10, %v2335_v14 }
 0xcaa   : > { %v2339_v16 = vadd.f32 %v2336_v15, %v3748_v35 }
 0xcac   : > { %v2345_v17 = vsel %vm1291_vm8, %v2339_v16, 0.0 }
 0xcad   : > { %2346 = vadd.xlane.f32.xlu0 %v2345_v17 }
 0xd18   : > { %v2344_v19 = vpop.xlane.xlu2 %2343 }
 0xd19   : > { %v2348_v20 = vmul.f32 %v2344_v19, %v3723_v59 }
 0xd1b   : > { %v2350_v21 = vsub.f32 %v2338_v13, %v2348_v20 }
 0xd1d   : > { %v2352_v18 = vmul.f32 %v2350_v21, %v2350_v21 }
 0xd1f   : > { %v2354_v22 = vsel %vm1291_vm8, %v2352_v18, 0.0 }
 0xd20   : > { %v2347_v24 = vpop.xlane.xlu0 %2346  ;;  %2355 = vadd.xlane.f32.xlu1 %v2354_v22 }
 0xd21   : > { %v2349_v25 = vmul.f32 %v2347_v24, %v3723_v59 }
 0xd23   : > { %v2351_v23 = vsub.f32 %v2339_v16, %v2349_v25 }
 0xd25   : > { %v2353_v26 = vmul.f32 %v2351_v23, %v2351_v23 }
 0xd27   : > { %v2357_v27 = vsel %vm1291_vm8, %v2353_v26, 0.0 }
 0xd28   : > { %2358 = vadd.xlane.f32.xlu2 %v2357_v27 }
 0xd93   : > { %v2356_v28 = vpop.xlane.xlu1 %2355 }
 0xd94   : > { %v2360_v29 = vmul.f32 %v2356_v28, %v3723_v59 }
 0xd96   : > { %v2362_v30 = vadd.f32 1e-05, %v2360_v29 }
 0xd98   : > { %3148 = vrsqrt.f32 %v2362_v30  ;;  %vm2370_vm3 = vweird.f32 %v2362_v30 }
 0xd9b   : > { %v2359_v31 = vpop.xlane.xlu2 %2358 }
 0xd9c   : > { %v2361_v32 = vmul.f32 %v2359_v31, %v3723_v59 }
 0xd9e   : > { %v3149_v33 = vpop.eup %3148  ;;  %v2363_v34 = vadd.f32 1e-05, %v2361_v32 }
 0xd9f   : > { %v2365_v35 = vmul.f32 %v3149_v33, %v2362_v30  ;;  %vm2371_vm2 = vweird.f32 %v3149_v33 }
 0xda0   : > { %3150 = vrsqrt.f32 %v2363_v34  ;;  %vm2372_vm4 = vmor %vm2370_vm3, %vm2371_vm2  ;;  %vm2380_vm6 = vweird.f32 %v2363_v34 }
 0xda1   : > { %v2366_v36 = vmul.f32 %v3149_v33, %v2365_v35 }
 0xda3   : > { %v2367_v37 = vmul.f32 0.5, %v2366_v36 }
 0xda5   : > { %v2368_v38 = vsub.f32 1.5, %v2367_v37 }
 0xda6   : > { %v3151_v39 = vpop.eup %3150 }
 0xda7   : > { %v2369_v40 = vmul.f32 %v3149_v33, %v2368_v38  ;;  %v2375_v41 = vmul.f32 %v3151_v39, %v2363_v34  ;;  %vm2381_vm5 = vweird.f32 %v3151_v39 }
 0xda8   : > { %vm2382_vm7 = vmor %vm2380_vm6, %vm2381_vm5 }
 0xda9   : > { %v2373_v43 = vsel %vm2372_vm4, %v3149_v33, %v2369_v40  ;;  %v2376_v44 = vmul.f32 %v3151_v39, %v2375_v41 }
 0xdaa   : > { %v2384_v46 = vmul.f32 %v2373_v43, %v2350_v21 }
 0xdab   : > { %v2377_v47 = vmul.f32 0.5, %v2376_v44 }
 0xdac   : > { %v2389_v48 = vmul.f32 %v3104_v42, %v2384_v46 }
 0xdad   : > { %v2378_v49 = vsub.f32 1.5, %v2377_v47 }
 0xdae   : > { %v2394_v50 = vadd.f32 %v3105_v45, %v2389_v48 }
 0xdaf   : > { %v2379_v51 = vmul.f32 %v3151_v39, %v2378_v49 }
 0xdb0   : > { %2396 = vst.msk [vmem:[#allocation2] sm:$0xff] %vm1291_vm8, %v2394_v50 }
 0xdb1   : > { %v2383_v52 = vsel %vm2382_vm7, %v3151_v39, %v2379_v51 }
 0xdb2   : > { %v2385_v53 = vmul.f32 %v2383_v52, %v2351_v23 }
 0xdb4   : > { %v2390_v54 = vmul.f32 %v3104_v42, %v2385_v53  ;;  %2401 = sbr.rel (%p2994_p10) target bundleno = 4070 (0xfe6), region = 148 }
 0xdb6   : > { %v2395_v55 = vadd.f32 %v3105_v45, %v2390_v54 }
 0xdb8   : > { %2397 = vst.msk [vmem:[#allocation2 + $0x8] sm:$0xff] %vm1291_vm8, %v2395_v55 }
 0xdb9   : > { %v2508_v62 = vld [vmem:[%s3918_s23 + $0x18] sm:$0xff]  ;;  %v2507_v56 = vld [vmem:[%s3918_s23 + $0x10] sm:$0xff]  ;;  %v2506_v57 = vld [vmem:[%s3918_s23 + $0x8] sm:$0xff]  ;;  %vm2403_vm9 = vcmask 253952   ;;  %vm2470_vm13 = vcmask 25600   ;;  %vm2595_vm14 = vcmask 523264  }
 0xdba   : > { %2528 = vmatpush.msra.mxu2 %v2508_v62  ;;  %v2505_v58 = vld [vmem:[%s3918_s23] sm:$0xff]  ;;  %v2411_v11 = vld [vmem:[%s3920_s29 + $0x18] sm:$0xff]  ;;  %v2410_v12 = vld [vmem:[%s3920_s29 + $0x10] sm:$0xff] }
 0xdbb   : > { %v3152_v7 = vld [vmem:[%s3919_s16] ss:$0 sm:$0xff]  ;;  %2431 = vmatpush.msra.mxu0 %v2411_v11  ;;  %v2409_v14 = vld [vmem:[%s3920_s29 + $0x8] sm:$0xff]  ;;  %v2571_v22 = vld [vmem:[%s3921_s8 + $0x18] sm:$0xff] }
 0xdbc   : > { %2529 = vmatpush.msra.mxu2 %v2507_v56  ;;  %v2402_v13 = vld [vmem:[#allocation2] sm:$0x1]  ;;  %v2570_v24 = vld [vmem:[%s3921_s8 + $0x10] sm:$0xff]  ;;  %v2442_v25 = vld [vmem:[%s3922_s21 + $0x18] sm:$0xff]  ;;  %2587 = vmatpush.msra.mxu3 %v2571_v22 }
 0xdbd   : > { %2404 = vst.msk [vmem:[#allocation3] sm:$0x1] %vm2403_vm9, %v2402_v13  ;;  %2432 = vmatpush.msra.mxu0 %v2410_v12  ;;  %v2408_v15 = vld [vmem:[%s3920_s29] sm:$0xff]  ;;  %2462 = vmatpush.msra.mxu1 %v2442_v25  ;;  %v2441_v23 = vld [vmem:[%s3922_s21 + $0x10] sm:$0xff]  ;;  %v2569_v26 = vld [vmem:[%s3921_s8 + $0x8] sm:$0xff] }
 0xdbe   : > { %2530 = vmatpush.msra.mxu2 %v2506_v57  ;;  %2588 = vmatpush.msra.mxu3 %v2570_v24  ;;  %v2568_v27 = vld [vmem:[%s3921_s8] sm:$0xff]  ;;  %v2440_v30 = vld [vmem:[%s3922_s21 + $0x8] sm:$0xff] }
 0xdbf   : > { %v2474_v61 = vld [vmem:[%s2473_s28] sm:$0x1]  ;;  %v2405_v2 = vld [vmem:[#allocation2 + $0x8] sm:$0x1]  ;;  %2433 = vmatpush.msra.mxu0 %v2409_v14  ;;  %2463 = vmatpush.msra.mxu1 %v2441_v23 }
 0xdc0   : > { %2531 = vmatpush.msra.mxu2 %v2505_v58  ;;  %2475 = vst.msk [vmem:[#allocation4] sm:$0x1] %vm2403_vm9, %v2474_v61  ;;  %v2478_v63 = vld [vmem:[%s2477_s1] sm:$0x1]  ;;  %2589 = vmatpush.msra.mxu3 %v2569_v26 }
 0xdc1   : > { %2479 = vst.msk [vmem:[#allocation4 + $0x1] sm:$0x1] %vm2403_vm9, %v2478_v63  ;;  %v2482_v0 = vld [vmem:[%s2481_s25] sm:$0x1]  ;;  %2434 = vmatpush.msra.mxu0 %v2408_v15  ;;  %2464 = vmatpush.msra.mxu1 %v2440_v30 }
 0xdc2   : > { %2483 = vst.msk [vmem:[#allocation4 + $0x2] sm:$0x1] %vm2403_vm9, %v2482_v0  ;;  %v2486_v1 = vld [vmem:[%s2485_s14] sm:$0x1]  ;;  %2590 = vmatpush.msra.mxu3 %v2568_v27 }
 0xdc3   : > { %2487 = vst.msk [vmem:[#allocation4 + $0x3] sm:$0x1] %vm2403_vm9, %v2486_v1  ;;  %v2490_v3 = vld [vmem:[%s2489_s13] sm:$0x1] }
 0xdc4   : > { %2491 = vst.msk [vmem:[#allocation4 + $0x4] sm:$0x1] %vm2403_vm9, %v2490_v3  ;;  %v2494_v4 = vld [vmem:[%s2493_s7] sm:$0x1] }
 0xdc5   : > { %2495 = vst.msk [vmem:[#allocation4 + $0x5] sm:$0x1] %vm2403_vm9, %v2494_v4  ;;  %v2498_v5 = vld [vmem:[%s2497_s3] sm:$0x1] }
 0xdc6   : > { %2499 = vst.msk [vmem:[#allocation4 + $0x6] sm:$0x1] %vm2403_vm9, %v2498_v5  ;;  %v2502_v6 = vld [vmem:[%s2501_s9] sm:$0x1] }
 0xdc7   : > { %2503 = vst.msk [vmem:[#allocation4 + $0x7] sm:$0x1] %vm2403_vm9, %v2502_v6  ;;  %v3155_v28 = vld [vmem:[%s3923_s10] ss:$0 sm:$0xff] }
 0xdc8   : > { %2406 = vst.msk [vmem:[#allocation3 + $0x1] sm:$0x1] %vm2403_vm9, %v2405_v2  ;;  %v2439_v31 = vld [vmem:[%s3922_s21] sm:$0xff] }
 0xdc9   : > { %2465 = vmatpush.msra.mxu1 %v2439_v31  ;;  %v3153_v42 = vld [vmem:[%s3924_s0] ss:$0 sm:$0xff] }
 0xdca   : > { %v3154_v45 = vld [vmem:[%s3925_s5] ss:$0 sm:$0xff] }
 0xdcb   : > { %v3156_v47 = vld [vmem:[%s3926_s18] ss:$0 sm:$0xff] }
 0xdce   : > { %v2504_v60 = vld [vmem:[#allocation4] sm:$0xff] }
 0xdcf   : > { %3004 = vmatmul.msk.f32.vlgmr.msra.gmra.mxu2 %vm1291_vm8, %v2504_v60  ;;  %v2407_v16 = vld [vmem:[#allocation3] sm:$0x3] }
 0xdd0   : > { %2995 = vmatmul.msk.f32.vlgmr.msra.gmra.mxu0 %vm1291_vm8, %v2407_v16 }
 0xe4d   : > { %v2436_v29 = vpop.f32.mrf.mxu0 }
 0xe4e   : > { %v2437_v32 = vadd.f32 %v3155_v28, %v2436_v29 }
 0xe50   : > { %2996 = vmatmul.msk.f32.vlgmr.msra.gmra.mxu1 %vm1291_vm8, %v2437_v32 }
 0xe52   : > { %v2533_v8 = vpop.f32.mrf.mxu2 }
 0xe53   : > { %v2534_v9 = vadd.f32 %v3152_v7, %v2533_v8 }
 0xe55   : > { %v2538_v10 = vsel %vm1291_vm8, %v2534_v9, 0.0 }
 0xe56   : > { %2539 = vadd.xlane.f32.xlu0 %v2538_v10 }
 0xec9   : > { %v2540_v17 = vpop.xlane.xlu0 %2539 }
 0xeca   : > { %v2541_v19 = vmul.f32 %v2540_v17, %v3723_v59 }
 0xecc   : > { %v2542_v20 = vsub.f32 %v2534_v9, %v2541_v19 }
 0xecd   : > { %v2467_v48 = vpop.f32.mrf.mxu1 }
 0xece   : > { %v2543_v21 = vmul.f32 %v2542_v20, %v2542_v20  ;;  %v2468_v49 = vadd.f32 %v3156_v47, %v2467_v48 }
 0xed0   : > { %v2544_v18 = vsel %vm1291_vm8, %v2543_v21, 0.0  ;;  %2471 = vst.msk [vmem:[#allocation7] sm:$0x3] %vm2470_vm13, %v2468_v49 }
 0xed1   : > { %2545 = vadd.xlane.f32.xlu0 %v2544_v18 }
 0xf44   : > { %v2546_v33 = vpop.xlane.xlu0 %2545 }
 0xf45   : > { %v2547_v34 = vmul.f32 %v2546_v33, %v3723_v59 }
 0xf47   : > { %v2548_v35 = vadd.f32 1e-05, %v2547_v34 }
 0xf49   : > { %3157 = vrsqrt.f32 %v2548_v35  ;;  %vm2555_vm11 = vweird.f32 %v2548_v35 }
 0xf4f   : > { %v3158_v36 = vpop.eup %3157 }
 0xf50   : > { %v2550_v37 = vmul.f32 %v3158_v36, %v2548_v35  ;;  %vm2556_vm10 = vweird.f32 %v3158_v36 }
 0xf51   : > { %vm2557_vm12 = vmor %vm2555_vm11, %vm2556_vm10 }
 0xf52   : > { %v2551_v38 = vmul.f32 %v3158_v36, %v2550_v37 }
 0xf54   : > { %v2552_v39 = vmul.f32 0.5, %v2551_v38 }
 0xf56   : > { %v2553_v40 = vsub.f32 1.5, %v2552_v39 }
 0xf58   : > { %v2554_v41 = vmul.f32 %v3158_v36, %v2553_v40 }
 0xf5a   : > { %v2558_v43 = vsel %vm2557_vm12, %v3158_v36, %v2554_v41 }
 0xf5b   : > { %v2559_v44 = vmul.f32 %v2558_v43, %v2542_v20 }
 0xf5d   : > { %v2563_v59 = vmul.f32 %v3153_v42, %v2559_v44 }
 0xf5f   : > { %v2567_v46 = vadd.f32 %v3154_v45, %v2563_v59 }
 0xf61   : > { %3005 = vmatmul.msk.f32.vlgmr.msra.gmra.mxu3 %vm1291_vm8, %v2567_v46 }
 0xfe4   : > { %v2592_v50 = vpop.f32.mrf.mxu3 }
 0xfe5   : > { %2596 = vst.msk [vmem:[#allocation9] sm:$0xff] %vm2595_vm14, %v2592_v50 }
 0xfe6 PF: > { %s3927_s22 = sld [smem:[#allocation39_spill]]  ;;  %s3280_s28 = smov [#allocation7]  }
 0xfe7   : > { %s3928_s26 = sld [smem:[#allocation36_spill]]  ;;  %s2603_s2 = sshll.u32 %s3280_s28, 4  ;;  %s2604_s2 = int_to_ptr.vmem [resolvable:$true] %s2603_s2 }
 0xfec   : > { %p3030_p11 = scmp.eq.s32.totalorder %s3927_s22, 1 }
 0xfed   : > { %s2605_s1 = sshll.u32 %s3928_s26, 4  ;;  %s3191_s16 = scalar_lea.hbm %s3928_s26, 2  ;;  %s2606_s1 = int_to_ptr.hbm [resolvable:$true] %s2605_s1 }
 0xfee   : > { %s3185_s25 = sshra.s32 %s2606_s1, 4  ;;  %s3186_s25 = int_to_ptr.hbm [resolvable:$true] %s3185_s25 }
 0xfef   : > { %s3187_s14 = scalar_lea.hbm %s3186_s25, 2  ;;  %p3192_p1 = scmp.lt.s32.totalorder %s3186_s25, %s3928_s26 }
 0xff0   : > { %p3188_p12 = scmp.ne.s32.totalorder %s3186_s25, %s3187_s14  ;;  %p3193_p2 = scmp.lt.s32.totalorder %s3191_s16, %s3187_s14 }
 0xff2   : > { %p3189_p13 = pnand %p3188_p12, %p3030_p11  ;;  %p3194_p3 = por %p3193_p2, %p3192_p1 }
 0xff4   : > { %p3190_p0 = pneg %p3189_p13 }
 0xff6   : > { %p3195_p4 = pnand %p3194_p3, %p3190_p0 }
 0xff8   : > { %3198 = shalt.err (!%p3195_p4)
}
 0xff9   : > { %s3929_s13 = sld [smem:[#allocation37_spill]]  ;;  %s3281_s3 = smov [#allocation9]  }
 0xffa   : > { %3023 = dma.vmem_to_hbm [thread:$0]  (%p3030_p11), %s2604_s2, 32, %s2606_s1, [#allocation8]  }
 0xffb   : > { %s2615_s9 = sshll.u32 %s3281_s3, 4  ;;  %s2616_s9 = int_to_ptr.vmem [resolvable:$true] %s2615_s9 }
 0xfff   : > { %s2617_s7 = sshll.u32 %s3929_s13, 4  ;;  %s3219_s5 = scalar_lea.hbm %s3929_s13, 8  ;;  %s2618_s7 = int_to_ptr.hbm [resolvable:$true] %s2617_s7 }
0x1000   : > { %s3213_s10 = sshra.s32 %s2618_s7, 4  ;;  %s3214_s10 = int_to_ptr.hbm [resolvable:$true] %s3213_s10 }
0x1001   : > { %s3215_s0 = scalar_lea.hbm %s3214_s10, 8  ;;  %p3220_p8 = scmp.lt.s32.totalorder %s3214_s10, %s3929_s13 }
0x1002   : > { %p3216_p5 = scmp.ne.s32.totalorder %s3214_s10, %s3215_s0  ;;  %p3221_p9 = scmp.lt.s32.totalorder %s3219_s5, %s3215_s0 }
0x1004   : > { %p3217_p6 = pnand %p3216_p5, %p3030_p11  ;;  %p3222_p10 = por %p3221_p9, %p3220_p8 }
0x1006   : > { %p3218_p7 = pneg %p3217_p6 }
0x1008   : > { %p3223_p12 = pnand %p3222_p10, %p3218_p7 }
0x100a   : > { %3226 = shalt.err (!%p3223_p12)
}
0x100b   : > { %3025 = dma.vmem_to_hbm [thread:$0]  (%p3030_p11), %s2616_s9, 128, %s2618_s7, [#allocation10]  }
0x100c   : > { %3234 = dma.done.wait (%p3030_p11), [#allocation8], 32  }
0x100d   : > { %3236 = vsyncadd (%p3030_p11), [#allocation8], 4294967264 }
0x100e   : > { %3238 = dma.done.wait (%p3030_p11), [#allocation10], 128  }
0x100f   : > { %3240 = vsyncadd (%p3030_p11), [#allocation10], 4294967168 }
0x1010 PF: > { %s3930_s18 = sld [smem:[#allocation38_spill]] }
0x1016   : > { %s86_s16 = sadd.s32 1, %s3930_s18  }
0x1017   : > { %p83_p13 = scmp.ge.s32.totalorder %s86_s16, 4  }
0x1019   :  { %85 = sbr.rel (!%p83_p13) target bundleno = 70 (0x46), region = 289 }
0x101e   :  { %2636 = vsyncpa [#allocation8], 1 }
0x101f   :  { %2638 = vsyncpa [#allocation8 + $0x1], 1 }
0x1020   :  { %2639 = vsyncpa [#allocation10], 1 }

</bundles_post_ra>
